<compile_context>
chip_gen: v7x
topology: tpu7x:2x2x1
jax: 0.10.0
libtpu: 0.0.40
codegen_flags: <defaults>
</compile_context>

<pallas_src>
import math

import jax
import jax.numpy as jnp
from jax import lax
from jax.experimental import pallas as pl
from jax.experimental.pallas import tpu as pltpu

LANE = 128


def _round_up(x, m):
    return (x + m - 1) // m * m


# ----------------------------------------------------------------------------
# Encoder: 3x3 conv, padding=1, NHWC im2col (glue) + row-tiled Pallas matmul.
# bf16 operands, f32 accumulation, bf16 output (feeds the bf16 query path).
# ----------------------------------------------------------------------------
def _enc_matmul_kernel(x_ref, w_ref, b_ref, o_ref):
    acc = jnp.dot(x_ref[...], w_ref[...], preferred_element_type=jnp.float32)
    o_ref[...] = (acc + b_ref[...]).astype(o_ref.dtype)


def encoder_conv_nhwc(x, wc, bc, tm=512):
    """x: (B, H, W, Cin) NHWC, wc: (Cout, Cin, 3, 3), bc: (Cout,) -> (B,H,W,Cout) bf16."""
    B, H, W, Cin = x.shape
    Cout = wc.shape[0]
    K = Cin * 9

    xb = x.astype(jnp.bfloat16)
    xp = jnp.pad(xb, ((0, 0), (1, 1), (1, 1), (0, 0)))
    cols = [xp[:, ki:ki + H, kj:kj + W, :] for ki in range(3) for kj in range(3)]
    # patch-feature index = c*9 + ki*3 + kj  (matches torch Conv2d weight flattening)
    patches = jnp.stack(cols, axis=-1).reshape(B, H, W, K)

    M = B * H * W
    xcol = patches.reshape(M, K)
    tm = max(16, min(tm, _round_up(M, 16)))
    gm = pl.cdiv(M, tm)
    Mp = gm * tm
    if Mp != M:
        xcol = jnp.pad(xcol, ((0, Mp - M), (0, 0)))
    wmat = wc.reshape(Cout, K).T.astype(jnp.bfloat16)      # (K, Cout)
    bmat = bc.reshape(1, Cout).astype(jnp.float32)

    out = pl.pallas_call(
        _enc_matmul_kernel,
        out_shape=jax.ShapeDtypeStruct((Mp, Cout), jnp.bfloat16),
        grid=(gm,),
        in_specs=[
            pl.BlockSpec((tm, K), lambda i: (i, 0)),
            pl.BlockSpec((K, Cout), lambda i: (0, 0)),
            pl.BlockSpec((1, Cout), lambda i: (0, 0)),
        ],
        out_specs=pl.BlockSpec((tm, Cout), lambda i: (i, 0)),
        compiler_params=pltpu.CompilerParams(
            dimension_semantics=("parallel",),
            vmem_limit_bytes=32 * 1024 * 1024,
        ),
    )(xcol, wmat, bmat)
    return out[:M].reshape(B, H, W, Cout)


# ----------------------------------------------------------------------------
# feat_unfold: F.unfold(feat, 3, padding=1), done in NHWC (bf16) -> (B, H*W, C*9)
# ----------------------------------------------------------------------------
def feat_unfold_nhwc(feat):
    B, H, W, C = feat.shape
    fp = jnp.pad(feat, ((0, 0), (1, 1), (1, 1), (0, 0)))
    cols = [fp[:, ki:ki + H, kj:kj + W, :] for ki in range(3) for kj in range(3)]
    unf = jnp.stack(cols, axis=-1).reshape(B, H, W, C * 9)   # index = c*9 + k
    return unf.reshape(B, H * W, C * 9)


# ----------------------------------------------------------------------------
# Nearest-neighbour (grid_sample mode='nearest', align_corners=False) indices,
# rel_coord / rel_cell (f32), and the normalized swapped ensemble weights.
# Cheap XLA glue: depends only on coord, cell and (H, W).
# ----------------------------------------------------------------------------
def _nearest_info(coord, cell, H, W):
    """Returns idx (B,4,Q) i32, aux (B,4,Q,4) f32 [rel_x,rel_y,rcx,rcy], wts (B,Q,4) f32."""
    cx, cy = coord[..., 0], coord[..., 1]
    rcx = cell[..., 0] * H
    rcy = cell[..., 1] * W
    rx, ry, eps = 1.0 / H, 1.0 / W, 1e-6
    shifts = [(-1.0, -1.0), (-1.0, 1.0), (1.0, -1.0), (1.0, 1.0)]
    idxs, auxs, areas = [], [], []
    for vx, vy in shifts:
        sx = jnp.clip(cx + vx * rx + eps, -1.0 + 1e-6, 1.0 - 1e-6)
        sy = jnp.clip(cy + vy * ry + eps, -1.0 + 1e-6, 1.0 - 1e-6)
        ix = jnp.clip(jnp.floor((sx + 1.0) * (0.5 * H)), 0.0, H - 1.0)
        iy = jnp.clip(jnp.floor((sy + 1.0) * (0.5 * W)), 0.0, W - 1.0)
        idxs.append((ix * W + iy).astype(jnp.int32))
        qx = -1.0 + (2.0 * ix + 1.0) / H
        qy = -1.0 + (2.0 * iy + 1.0) / W
        rel_x = (cx - qx) * H
        rel_y = (cy - qy) * W
        auxs.append(jnp.stack([rel_x, rel_y, rcx, rcy], axis=-1))
        areas.append(jnp.abs(rel_x * rel_y) + 1e-9)
    idx = jnp.stack(idxs, axis=1)                     # (B, 4, Q)
    aux = jnp.stack(auxs, axis=1)                     # (B, 4, Q, 4)
    tot = areas[0] + areas[1] + areas[2] + areas[3]
    # local-ensemble diagonal swap: pred[s] is weighted by area[3-s] / tot
    wts = jnp.stack([areas[3], areas[2], areas[1], areas[0]], axis=-1) / tot[..., None]
    return idx, aux, wts.astype(jnp.float32)


# ----------------------------------------------------------------------------
# imnet parameter padding: K (= C9+4) rounded to 16, hidden/out_dim padded to
# 128 lanes; MXU operands cast to bf16 (accumulation stays f32, biases f32).
# ----------------------------------------------------------------------------
def _pad_imnet_params(params, c9, kp):
    hidden = params["w1"].shape[1]
    out_dim = params["w3"].shape[1]
    assert params["w1"].shape[0] == c9 + 4        # feat_unfold + rel_coord + rel_cell
    assert hidden <= LANE and out_dim <= LANE

    def pad2(a, r, c):
        return jnp.pad(a, ((0, r - a.shape[0]), (0, c - a.shape[1])))

    return {
        "w1": pad2(params["w1"], kp, LANE).astype(jnp.bfloat16),
        "b1": pad2(params["b1"], 1, LANE).astype(jnp.float32),
        "w2": pad2(params["w2"], LANE, LANE).astype(jnp.bfloat16),
        "b2": pad2(params["b2"], 1, LANE).astype(jnp.float32),
        "w3": pad2(params["w3"], LANE, LANE).astype(jnp.bfloat16),
        "b3": pad2(params["b3"], 1, LANE).astype(jnp.float32),
    }


# ----------------------------------------------------------------------------
# Query kernel: per (batch, Q-tile) grid cell it runs the imnet MLP on all
# four ensemble shifts at once (4*TQ rows), with rel_coord/rel_cell already
# packed into the feature lanes and ensemble weights precomputed in the
# wrapper.  Three bf16 MXU matmuls (f32 accum) + one weighted sum, stored
# lane-dense 128-wide in bf16.
# ----------------------------------------------------------------------------
def _make_query_kernel(tq, kp):
    def kernel(qf_ref, wt_ref, w1_ref, b1_ref, w2_ref, b2_ref, w3_ref, b3_ref,
               out_ref):
        qf = qf_ref[0].reshape(4 * tq, kp)                      # (4*TQ, Kp) bf16

        h = jnp.dot(qf, w1_ref[...], preferred_element_type=jnp.float32)
        h = jnp.maximum(h + b1_ref[...], 0.0)
        h = jnp.dot(h.astype(jnp.bfloat16), w2_ref[...],
                    preferred_element_type=jnp.float32)
        h = jnp.maximum(h + b2_ref[...], 0.0)
        pred = jnp.dot(h.astype(jnp.bfloat16), w3_ref[...],
                       preferred_element_type=jnp.float32) + b3_ref[...]

        wt = wt_ref[0]                                          # (TQ, 4) f32
        ret = (pred[0 * tq:1 * tq] * wt[:, 0:1]
               + pred[1 * tq:2 * tq] * wt[:, 1:2]
               + pred[2 * tq:3 * tq] * wt[:, 2:3]
               + pred[3 * tq:4 * tq] * wt[:, 3:4])
        out_ref[0] = ret.astype(out_ref.dtype)                  # (TQ, 128) bf16

    return kernel


def liif_query(feat_flat, coord, cell, params, H, W, tq=1024):
    B, HW, C9 = feat_flat.shape
    Q = coord.shape[1]
    out_dim = params["w3"].shape[1]
    K = C9 + 4
    Kp = _round_up(K, 16)
    pp = _pad_imnet_params(params, C9, Kp)

    # nearest-neighbour indices + rel_coord / rel_cell + ensemble weights (f32 glue)
    idx, aux, wts = _nearest_info(coord, cell, H, W)

    # row gather from the compact bf16 unfolded features (XLA dynamic gather).
    # TODO(synk): fuse this gather into the kernel (scalar-prefetched idx +
    #             per-batch resident feat tile) to avoid the 4x-replicated copy.
    feat_bf = feat_flat.astype(jnp.bfloat16)
    idx_flat = idx.reshape(B, 4 * Q)
    gath = jnp.take_along_axis(
        feat_bf, jnp.broadcast_to(idx_flat[..., None], (B, 4 * Q, C9)), axis=1)
    gath = gath.reshape(B, 4, Q, C9)

    # pack rel_coord / rel_cell into lanes C9..C9+3 (bf16) -> one clean matmul
    qf = jnp.concatenate([gath, aux.astype(jnp.bfloat16)], axis=-1)   # (B,4,Q,K)

    # tile Q; pad queries + K lanes (padded rows stay finite; sliced off below)
    tq = max(16, min(tq, _round_up(Q, 16)))
    nq = pl.cdiv(Q, tq)
    Qp = nq * tq
    qf = jnp.pad(qf, ((0, 0), (0, 0), (0, Qp - Q), (0, Kp - K)))
    wts = jnp.pad(wts, ((0, 0), (0, Qp - Q), (0, 0)))

    out = pl.pallas_call(
        _make_query_kernel(tq, Kp),
        out_shape=jax.ShapeDtypeStruct((B, Qp, LANE), jnp.bfloat16),
        grid=(B, nq),
        in_specs=[
            pl.BlockSpec((1, 4, tq, Kp), lambda b, q: (b, 0, q, 0)),
            pl.BlockSpec((1, tq, 4), lambda b, q: (b, q, 0)),
            pl.BlockSpec((Kp, LANE), lambda b, q: (0, 0)),
            pl.BlockSpec((1, LANE), lambda b, q: (0, 0)),
            pl.BlockSpec((LANE, LANE), lambda b, q: (0, 0)),
            pl.BlockSpec((1, LANE), lambda b, q: (0, 0)),
            pl.BlockSpec((LANE, LANE), lambda b, q: (0, 0)),
            pl.BlockSpec((1, LANE), lambda b, q: (0, 0)),
        ],
        out_specs=pl.BlockSpec((1, tq, LANE), lambda b, q: (b, q, 0)),
        compiler_params=pltpu.CompilerParams(
            dimension_semantics=("parallel", "parallel"),
            vmem_limit_bytes=32 * 1024 * 1024,
        ),
    )(qf, wts, pp["w1"], pp["b1"], pp["w2"], pp["b2"], pp["w3"], pp["b3"])
    return out[:, :Q, :out_dim].astype(jnp.float32)


# ----------------------------------------------------------------------------
# Full forward (encoder conv -> feat_unfold -> query kernel), NHWC bf16 glue.
# ----------------------------------------------------------------------------
def liif_forward(inp, coord, cell, enc_w, enc_b, params, tq=1024):
    """inp: (B, Cin, H, W) NCHW like the PyTorch module; coord/cell: (B, Q, 2)."""
    x = inp.transpose(0, 2, 3, 1)                     # only the small input is transposed
    feat = encoder_conv_nhwc(x, enc_w, enc_b)         # (B, H, W, C) bf16
    feat_flat = feat_unfold_nhwc(feat)                # (B, H*W, C*9) bf16
    H, W = feat.shape[1], feat.shape[2]
    return liif_query(feat_flat, coord, cell, params, H, W, tq=tq)


# ----------------------------------------------------------------------------
# Pure-JAX f32 reference of query_rgb (mirrors PyTorch semantics) for checking.
# ----------------------------------------------------------------------------
def liif_reference(feat_flat, coord, cell, params, H, W):
    feat_flat = feat_flat.astype(jnp.float32)
    B, HW, C9 = feat_flat.shape
    Q = coord.shape[1]
    rx, ry, eps = 1.0 / H, 1.0 / W, 1e-6
    preds, areas = [], []
    for vx in (-1.0, 1.0):
        for vy in (-1.0, 1.0):
            sx = jnp.clip(coord[..., 0] + vx * rx + eps, -1 + 1e-6, 1 - 1e-6)
            sy = jnp.clip(coord[..., 1] + vy * ry + eps, -1 + 1e-6, 1 - 1e-6)
            ix = jnp.clip(jnp.floor((sx + 1.0) * 0.5 * H), 0, H - 1).astype(jnp.int32)
            iy = jnp.clip(jnp.floor((sy + 1.0) * 0.5 * W), 0, W - 1).astype(jnp.int32)
            flat = ix * W + iy
            q_feat = jnp.take_along_axis(
                feat_flat, jnp.broadcast_to(flat[..., None], (B, Q, C9)), axis=1)
            qx = -1.0 + (2.0 * ix + 1.0) / H
            qy = -1.0 + (2.0 * iy + 1.0) / W
            rel_x = (coord[..., 0] - qx) * H
            rel_y = (coord[..., 1] - qy) * W
            rel_cell = cell * jnp.array([H, W], jnp.float32)
            mlp_in = jnp.concatenate(
                [q_feat, rel_x[..., None], rel_y[..., None], rel_cell], axis=-1)
            h = jax.nn.relu(mlp_in @ params["w1"] + params["b1"])
            h = jax.nn.relu(h @ params["w2"] + params["b2"])
            preds.append(h @ params["w3"] + params["b3"])
            areas.append(jnp.abs(rel_x * rel_y) + 1e-9)
    tot = sum(areas)
    areas[0], areas[3] = areas[3], areas[0]
    areas[1], areas[2] = areas[2], areas[1]
    ret = 0
    for p, a in zip(preds, areas):
        ret = ret + p * (a / tot)[..., None]
    return ret


if __name__ == "__main__":
    B, Cin, H, W = 2, 3, 16, 16
    Cout = 8                      # encoder.out_dim
    Q = 64                        # number of query points
    hidden, out_dim = 32, 3
    C9 = Cout * 9
    D_in = C9 + 2 + 2             # feat_unfold + rel_coord + rel_cell

    key = jax.random.PRNGKey(0)
    ks = jax.random.split(key, 12)

    # encoder conv params
    enc_w = jax.random.normal(ks[0], (Cout, Cin, 3, 3), jnp.float32) * 0.1
    enc_b = jax.random.normal(ks[1], (Cout,), jnp.float32) * 0.01

    # imnet MLP params (in_dim -> 32 -> 32 -> 3)
    params = {
        "w1": jax.random.normal(ks[2], (D_in, hidden), jnp.float32) / math.sqrt(D_in),
        "b1": jax.random.normal(ks[3], (1, hidden), jnp.float32) * 0.01,
        "w2": jax.random.normal(ks[4], (hidden, hidden), jnp.float32) / math.sqrt(hidden),
        "b2": jax.random.normal(ks[5], (1, hidden), jnp.float32) * 0.01,
        "w3": jax.random.normal(ks[6], (hidden, out_dim), jnp.float32) / math.sqrt(hidden),
        "b3": jax.random.normal(ks[7], (1, out_dim), jnp.float32) * 0.01,
    }

    # inputs
    inp = jax.random.normal(ks[8], (B, Cin, H, W), jnp.float32)
    coord = jax.random.uniform(ks[9], (B, Q, 2), jnp.float32, -1.0, 1.0)
    cell = jnp.full((B, Q, 2), 2.0 / 32.0, jnp.float32) \
        + jax.random.uniform(ks[10], (B, Q, 2), jnp.float32, 0.0, 1e-3)

    fwd = jax.jit(liif_forward)
    out = jax.block_until_ready(fwd(inp, coord, cell, enc_w, enc_b, params))
    assert out.shape == (B, Q, out_dim), out.shape
    assert bool(jnp.all(jnp.isfinite(out)))

    # encoder check against XLA's native conv (f32)
    feat = encoder_conv_nhwc(inp.transpose(0, 2, 3, 1), enc_w, enc_b)
    conv_ref = lax.conv_general_dilated(
        inp.transpose(0, 2, 3, 1), enc_w.transpose(2, 3, 1, 0),
        window_strides=(1, 1), padding="SAME",
        dimension_numbers=("NHWC", "HWIO", "NHWC")) + enc_b
    enc_err = float(jnp.max(jnp.abs(feat.astype(jnp.float32) - conv_ref)))
    assert enc_err < 3e-2, f"enc_err={enc_err}"

    # query-path check against a pure-JAX f32 re-implementation of query_rgb
    # (same bf16 features on both sides; isolates the Pallas query kernel)
    feat_flat = feat_unfold_nhwc(feat)
    ref = jax.block_until_ready(liif_reference(feat_flat, coord, cell, params, H, W))
    max_err = float(jnp.max(jnp.abs(out - ref)))
    assert max_err < 5e-2, f"max_err={max_err}"

    print("KERNEL_OK")
</pallas_src>

<mosaic_0001>
module attributes {stable_mosaic.version = 11 : i64} {
  func.func private @main(%arg0: i32) attributes {dimension_semantics = [#tpu.dimension_semantics<core_parallel>], iteration_bounds = array<i64: 2>, tpu.core_type = #tpu.core_type<sc_scalar_subcore>, window_params = []} {
    return
  }
}

module attributes {stable_mosaic.version = 11 : i64} {
  func.func private @main(%arg0: i32) attributes {dimension_semantics = [#tpu.dimension_semantics<core_parallel>], iteration_bounds = array<i64: 2>, tpu.core_type = #tpu.core_type<sc_scalar_subcore>, window_params = []} {
    return
  }
}

module attributes {stable_mosaic.version = 11 : i64} {
  func.func @_enc_matmul_kernel(%arg0: i32, %arg1: memref<512x27xbf16, #tpu.memory_space<vmem>>, %arg2: memref<27x8xbf16, #tpu.memory_space<vmem>>, %arg3: memref<1x8xf32, #tpu.memory_space<vmem>>, %arg4: memref<512x8xbf16, #tpu.memory_space<vmem>>) attributes {dimension_semantics = [#tpu.dimension_semantics<parallel>], iteration_bounds = array<i64: 1>, scalar_prefetch = 0 : i64, scratch_operands = 0 : i64, tpu.core_type = #tpu.core_type<tc>, window_params = [{transform_indices = @transform_0, window_bounds = array<i64: 512, 27>}, {pipeline_mode = #tpu.pipeline_mode<synchronous>, transform_indices = @transform_1, window_bounds = array<i64: 27, 8>}, {pipeline_mode = #tpu.pipeline_mode<synchronous>, transform_indices = @transform_2, window_bounds = array<i64: 1, 8>}, {transform_indices = @transform_3, window_bounds = array<i64: 512, 8>}]} {
    %c0 = arith.constant 0 : index
    %c0_0 = arith.constant 0 : index
    %0 = vector.load %arg1[%c0, %c0_0] : memref<512x27xbf16, #tpu.memory_space<vmem>>, vector<512x27xbf16>
    %c0_1 = arith.constant 0 : index
    %c0_2 = arith.constant 0 : index
    %1 = vector.load %arg2[%c0_1, %c0_2] : memref<27x8xbf16, #tpu.memory_space<vmem>>, vector<27x8xbf16>
    %cst = arith.constant dense<0.000000e+00> : vector<512x8xf32>
    %2 = tpu.matmul %0, %1, %cst {dimension_numbers = #tpu.dot_dimension_numbers<[1], [0], [0], [1], [0, 0, 1, 1], [], []>} : vector<512x27xbf16>, vector<27x8xbf16>, vector<512x8xf32> -> vector<512x8xf32>
    %c0_3 = arith.constant 0 : index
    %c0_4 = arith.constant 0 : index
    %3 = vector.load %arg3[%c0_3, %c0_4] : memref<1x8xf32, #tpu.memory_space<vmem>>, vector<1x8xf32>
    %4 = vector.broadcast %3 : vector<1x8xf32> to vector<512x8xf32>
    %5 = arith.addf %2, %4 : vector<512x8xf32>
    %6 = arith.truncf %5 : vector<512x8xf32> to vector<512x8xbf16>
    %c0_5 = arith.constant 0 : index
    %c0_6 = arith.constant 0 : index
    %7 = vector.load %arg4[%c0_5, %c0_6] : memref<512x8xbf16, #tpu.memory_space<vmem>>, vector<512x8xbf16>
    tpu.vector_store %arg4[%c0_5, %c0_6], %6 {strides = array<i32>} : memref<512x8xbf16, #tpu.memory_space<vmem>>, vector<512x8xbf16>,
    return
  }
  func.func @transform_0(%arg0: i32) -> (i32, i32) {
    %c0_i32 = arith.constant 0 : i32
    %c0_i32_0 = arith.constant 0 : i32
    return %arg0, %c0_i32 : i32, i32
  }
  func.func @transform_1(%arg0: i32) -> (i32, i32) {
    %c0_i32 = arith.constant 0 : i32
    %c0_i32_0 = arith.constant 0 : i32
    %c0_i32_1 = arith.constant 0 : i32
    return %c0_i32, %c0_i32_0 : i32, i32
  }
  func.func @transform_2(%arg0: i32) -> (i32, i32) {
    %c0_i32 = arith.constant 0 : i32
    %c0_i32_0 = arith.constant 0 : i32
    %c0_i32_1 = arith.constant 0 : i32
    return %c0_i32, %c0_i32_0 : i32, i32
  }
  func.func @transform_3(%arg0: i32) -> (i32, i32) {
    %c0_i32 = arith.constant 0 : i32
    %c0_i32_0 = arith.constant 0 : i32
    return %arg0, %c0_i32 : i32, i32
  }
}

module attributes {stable_mosaic.version = 11 : i64} {
  func.func @kernel(%arg0: i32, %arg1: i32, %arg2: memref<1x4x64x80xbf16, #tpu.memory_space<vmem>>, %arg3: memref<1x64x4xf32, #tpu.memory_space<vmem>>, %arg4: memref<80x128xbf16, #tpu.memory_space<vmem>>, %arg5: memref<1x128xf32, #tpu.memory_space<vmem>>, %arg6: memref<128x128xbf16, #tpu.memory_space<vmem>>, %arg7: memref<1x128xf32, #tpu.memory_space<vmem>>, %arg8: memref<128x128xbf16, #tpu.memory_space<vmem>>, %arg9: memref<1x128xf32, #tpu.memory_space<vmem>>, %arg10: memref<1x64x128xbf16, #tpu.memory_space<vmem>>) attributes {dimension_semantics = [#tpu.dimension_semantics<parallel>, #tpu.dimension_semantics<parallel>], iteration_bounds = array<i64: 2, 1>, scalar_prefetch = 0 : i64, scratch_operands = 0 : i64, tpu.core_type = #tpu.core_type<tc>, window_params = [{transform_indices = @transform_0, window_bounds = array<i64: 1, 4, 64, 80>}, {transform_indices = @transform_1, window_bounds = array<i64: 1, 64, 4>}, {pipeline_mode = #tpu.pipeline_mode<synchronous>, transform_indices = @transform_2, window_bounds = array<i64: 80, 128>}, {pipeline_mode = #tpu.pipeline_mode<synchronous>, transform_indices = @transform_3, window_bounds = array<i64: 1, 128>}, {pipeline_mode = #tpu.pipeline_mode<synchronous>, transform_indices = @transform_4, window_bounds = array<i64: 128, 128>}, {pipeline_mode = #tpu.pipeline_mode<synchronous>, transform_indices = @transform_5, window_bounds = array<i64: 1, 128>}, {pipeline_mode = #tpu.pipeline_mode<synchronous>, transform_indices = @transform_6, window_bounds = array<i64: 128, 128>}, {pipeline_mode = #tpu.pipeline_mode<synchronous>, transform_indices = @transform_7, window_bounds = array<i64: 1, 128>}, {transform_indices = @transform_8, window_bounds = array<i64: 1, 64, 128>}]} {
    %c0 = arith.constant 0 : index
    %c0_0 = arith.constant 0 : index
    %c0_1 = arith.constant 0 : index
    %c0_2 = arith.constant 0 : index
    %0 = vector.load %arg2[%c0, %c0_0, %c0_1, %c0_2] : memref<1x4x64x80xbf16, #tpu.memory_space<vmem>>, vector<1x4x64x80xbf16>
    %1 = vector.shape_cast %0 : vector<1x4x64x80xbf16> to vector<4x64x80xbf16>
    %2 = vector.shape_cast %1 : vector<4x64x80xbf16> to vector<256x80xbf16>
    %c0_3 = arith.constant 0 : index
    %c0_4 = arith.constant 0 : index
    %3 = vector.load %arg4[%c0_3, %c0_4] : memref<80x128xbf16, #tpu.memory_space<vmem>>, vector<80x128xbf16>
    %cst = arith.constant dense<0.000000e+00> : vector<256x128xf32>
    %4 = tpu.matmul %2, %3, %cst {dimension_numbers = #tpu.dot_dimension_numbers<[1], [0], [0], [1], [0, 0, 1, 1], [], []>} : vector<256x80xbf16>, vector<80x128xbf16>, vector<256x128xf32> -> vector<256x128xf32>
    %c0_5 = arith.constant 0 : index
    %c0_6 = arith.constant 0 : index
    %5 = vector.load %arg5[%c0_5, %c0_6] : memref<1x128xf32, #tpu.memory_space<vmem>>, vector<1x128xf32>
    %6 = vector.broadcast %5 : vector<1x128xf32> to vector<256x128xf32>
    %7 = arith.addf %4, %6 : vector<256x128xf32>
    %cst_7 = arith.constant 0.000000e+00 : f32
    %8 = vector.broadcast %cst_7 : f32 to vector<256x128xf32>
    %9 = arith.maximumf %7, %8 : vector<256x128xf32>
    %10 = arith.truncf %9 : vector<256x128xf32> to vector<256x128xbf16>
    %c0_8 = arith.constant 0 : index
    %c0_9 = arith.constant 0 : index
    %11 = vector.load %arg6[%c0_8, %c0_9] : memref<128x128xbf16, #tpu.memory_space<vmem>>, vector<128x128xbf16>
    %cst_10 = arith.constant dense<0.000000e+00> : vector<256x128xf32>
    %12 = tpu.matmul %10, %11, %cst_10 {dimension_numbers = #tpu.dot_dimension_numbers<[1], [0], [0], [1], [0, 0, 1, 1], [], []>} : vector<256x128xbf16>, vector<128x128xbf16>, vector<256x128xf32> -> vector<256x128xf32>
    %c0_11 = arith.constant 0 : index
    %c0_12 = arith.constant 0 : index
    %13 = vector.load %arg7[%c0_11, %c0_12] : memref<1x128xf32, #tpu.memory_space<vmem>>, vector<1x128xf32>
    %14 = vector.broadcast %13 : vector<1x128xf32> to vector<256x128xf32>
    %15 = arith.addf %12, %14 : vector<256x128xf32>
    %cst_13 = arith.constant 0.000000e+00 : f32
    %16 = vector.broadcast %cst_13 : f32 to vector<256x128xf32>
    %17 = arith.maximumf %15, %16 : vector<256x128xf32>
    %18 = arith.truncf %17 : vector<256x128xf32> to vector<256x128xbf16>
    %c0_14 = arith.constant 0 : index
    %c0_15 = arith.constant 0 : index
    %19 = vector.load %arg8[%c0_14, %c0_15] : memref<128x128xbf16, #tpu.memory_space<vmem>>, vector<128x128xbf16>
    %cst_16 = arith.constant dense<0.000000e+00> : vector<256x128xf32>
    %20 = tpu.matmul %18, %19, %cst_16 {dimension_numbers = #tpu.dot_dimension_numbers<[1], [0], [0], [1], [0, 0, 1, 1], [], []>} : vector<256x128xbf16>, vector<128x128xbf16>, vector<256x128xf32> -> vector<256x128xf32>
    %c0_17 = arith.constant 0 : index
    %c0_18 = arith.constant 0 : index
    %21 = vector.load %arg9[%c0_17, %c0_18] : memref<1x128xf32, #tpu.memory_space<vmem>>, vector<1x128xf32>
    %22 = vector.broadcast %21 : vector<1x128xf32> to vector<256x128xf32>
    %23 = arith.addf %20, %22 : vector<256x128xf32>
    %c0_19 = arith.constant 0 : index
    %c0_20 = arith.constant 0 : index
    %c0_21 = arith.constant 0 : index
    %24 = vector.load %arg3[%c0_19, %c0_20, %c0_21] : memref<1x64x4xf32, #tpu.memory_space<vmem>>, vector<1x64x4xf32>
    %25 = vector.shape_cast %24 : vector<1x64x4xf32> to vector<64x4xf32>
    %26 = vector.extract_strided_slice %23 {offsets = [0, 0], sizes = [64, 128], strides = [1, 1]} : vector<256x128xf32> to vector<64x128xf32>
    %27 = vector.extract_strided_slice %25 {offsets = [0, 0], sizes = [64, 1], strides = [1, 1]} : vector<64x4xf32> to vector<64x1xf32>
    %28 = vector.broadcast %27 : vector<64x1xf32> to vector<64x128xf32>
    %29 = arith.mulf %26, %28 : vector<64x128xf32>
    %30 = vector.extract_strided_slice %23 {offsets = [64, 0], sizes = [64, 128], strides = [1, 1]} : vector<256x128xf32> to vector<64x128xf32>
    %31 = vector.extract_strided_slice %25 {offsets = [0, 1], sizes = [64, 1], strides = [1, 1]} : vector<64x4xf32> to vector<64x1xf32>
    %32 = vector.broadcast %31 : vector<64x1xf32> to vector<64x128xf32>
    %33 = arith.mulf %30, %32 : vector<64x128xf32>
    %34 = arith.addf %29, %33 : vector<64x128xf32>
    %35 = vector.extract_strided_slice %23 {offsets = [128, 0], sizes = [64, 128], strides = [1, 1]} : vector<256x128xf32> to vector<64x128xf32>
    %36 = vector.extract_strided_slice %25 {offsets = [0, 2], sizes = [64, 1], strides = [1, 1]} : vector<64x4xf32> to vector<64x1xf32>
    %37 = vector.broadcast %36 : vector<64x1xf32> to vector<64x128xf32>
    %38 = arith.mulf %35, %37 : vector<64x128xf32>
    %39 = arith.addf %34, %38 : vector<64x128xf32>
    %40 = vector.extract_strided_slice %23 {offsets = [192, 0], sizes = [64, 128], strides = [1, 1]} : vector<256x128xf32> to vector<64x128xf32>
    %41 = vector.extract_strided_slice %25 {offsets = [0, 3], sizes = [64, 1], strides = [1, 1]} : vector<64x4xf32> to vector<64x1xf32>
    %42 = vector.broadcast %41 : vector<64x1xf32> to vector<64x128xf32>
    %43 = arith.mulf %40, %42 : vector<64x128xf32>
    %44 = arith.addf %39, %43 : vector<64x128xf32>
    %45 = arith.truncf %44 : vector<64x128xf32> to vector<64x128xbf16>
    %c0_22 = arith.constant 0 : index
    %c0_23 = arith.constant 0 : index
    %c0_24 = arith.constant 0 : index
    %46 = vector.load %arg10[%c0_22, %c0_23, %c0_24] : memref<1x64x128xbf16, #tpu.memory_space<vmem>>, vector<1x64x128xbf16>
    %47 = vector.shape_cast %46 : vector<1x64x128xbf16> to vector<64x128xbf16>
    %48 = vector.shape_cast %45 : vector<64x128xbf16> to vector<1x64x128xbf16>
    tpu.vector_store %arg10[%c0_22, %c0_23, %c0_24], %48 {strides = array<i32>} : memref<1x64x128xbf16, #tpu.memory_space<vmem>>, vector<1x64x128xbf16>,
    return
  }
  func.func @transform_0(%arg0: i32, %arg1: i32) -> (i32, i32, i32, i32) {
    %c0_i32 = arith.constant 0 : i32
    %c0_i32_0 = arith.constant 0 : i32
    %c0_i32_1 = arith.constant 0 : i32
    return %arg0, %c0_i32, %arg1, %c0_i32_0 : i32, i32, i32, i32
  }
  func.func @transform_1(%arg0: i32, %arg1: i32) -> (i32, i32, i32) {
    %c0_i32 = arith.constant 0 : i32
    %c0_i32_0 = arith.constant 0 : i32
    return %arg0, %arg1, %c0_i32 : i32, i32, i32
  }
  func.func @transform_2(%arg0: i32, %arg1: i32) -> (i32, i32) {
    %c0_i32 = arith.constant 0 : i32
    %c0_i32_0 = arith.constant 0 : i32
    %c0_i32_1 = arith.constant 0 : i32
    return %c0_i32, %c0_i32_0 : i32, i32
  }
  func.func @transform_3(%arg0: i32, %arg1: i32) -> (i32, i32) {
    %c0_i32 = arith.constant 0 : i32
    %c0_i32_0 = arith.constant 0 : i32
    %c0_i32_1 = arith.constant 0 : i32
    return %c0_i32, %c0_i32_0 : i32, i32
  }
  func.func @transform_4(%arg0: i32, %arg1: i32) -> (i32, i32) {
    %c0_i32 = arith.constant 0 : i32
    %c0_i32_0 = arith.constant 0 : i32
    %c0_i32_1 = arith.constant 0 : i32
    return %c0_i32, %c0_i32_0 : i32, i32
  }
  func.func @transform_5(%arg0: i32, %arg1: i32) -> (i32, i32) {
    %c0_i32 = arith.constant 0 : i32
    %c0_i32_0 = arith.constant 0 : i32
    %c0_i32_1 = arith.constant 0 : i32
    return %c0_i32, %c0_i32_0 : i32, i32
  }
  func.func @transform_6(%arg0: i32, %arg1: i32) -> (i32, i32) {
    %c0_i32 = arith.constant 0 : i32
    %c0_i32_0 = arith.constant 0 : i32
    %c0_i32_1 = arith.constant 0 : i32
    return %c0_i32, %c0_i32_0 : i32, i32
  }
  func.func @transform_7(%arg0: i32, %arg1: i32) -> (i32, i32) {
    %c0_i32 = arith.constant 0 : i32
    %c0_i32_0 = arith.constant 0 : i32
    %c0_i32_1 = arith.constant 0 : i32
    return %c0_i32, %c0_i32_0 : i32, i32
  }
  func.func @transform_8(%arg0: i32, %arg1: i32) -> (i32, i32, i32) {
    %c0_i32 = arith.constant 0 : i32
    %c0_i32_0 = arith.constant 0 : i32
    return %arg0, %arg1, %c0_i32 : i32, i32, i32
  }
}

</mosaic_0001>

<bundles_post_ra>
// kernel: liif_forward.2
= control target key start
LH: loop header
LB: loop body
LE: loop exit
PB: predicated region body
PF: predicated region fallthrough
CT: control target
= control target key end

     0   :  { %vm358_vm0 = vcmask 1044480   ;;  %vm359_vm1 = vcmask 1045504   ;;  %vm261_vm2 = vcmask 220160   ;;  %v1315_v1 = vmov 65535   ;;  %s1795_s1 = inlined_call_operand.vmem [shape: bf16[27,8], index: 1, kind: input, shape index: {}]   ;;  %s1796_s0 = inlined_call_operand.vmem [shape: bf16[512,27], index: 0, kind: input, shape index: {}]   ;;  %s1797_s2 = inlined_call_operand.vmem [shape: f32[1,8], index: 2, kind: input, shape index: {}]   ;;  %s1798_s3 = inlined_call_operand.vmem [shape: bf16[512,8], index: 3, kind: output, shape index: {}]  }
   0x1   :  { %v1281_v0 = vld [vmem:[%s1795_s1] sm:$0xff]   ;;  %v360_v2 = vsel %vm358_vm0, 4294967295, %v1315_v1  ;;  %v1282_v3 = vld [vmem:[%s1795_s1 + $0x8] sm:$0x3f]   ;;  %v1287_v10 = vld [vmem:[%s1796_s0 + $0x10] sm:$0xff]   ;;  %vm910_vm3 = vcmask 60416  }
   0x2   :  { %1208 = vmatprep.subr.bf16.mxu0 %v1281_v0  ;;  %1276 = vmatprep.subr.bf16.mxu1 %v1281_v0  ;;  %v361_v4 = vsel %vm359_vm1, %v360_v2, 0  ;;  %v1283_v5 = vld [vmem:[%s1796_s0] sm:$0xff]   ;;  %v1285_v8 = vld [vmem:[%s1796_s0 + $0x8] sm:$0xff]   ;;  %v1288_v11 = vld [vmem:[%s1796_s0 + $0x90] sm:$0xff]  }
   0x3   :  { %1209 = vmatpush3.bf16.msra.mxu0 %v1281_v0  ;;  %1278 = vmatpush3.bf16.msra.mxu1 %v1281_v0  ;;  %v363_v6 = vand.u32 %v1282_v3, %v361_v4  ;;  %v1284_v7 = vld [vmem:[%s1796_s0 + $0x80] sm:$0xff]   ;;  %v1286_v9 = vld [vmem:[%s1796_s0 + $0x88] sm:$0xff]   ;;  %v1289_v12 = vld [vmem:[%s1796_s0 + $0x18] sm:$0xff]  }
   0x4   :  { %1212 = vmatprep.mubr.msk.bf16.mxu0 %vm261_vm2, %v1283_v5  ;;  %1244 = vmatprep.mubr.msk.bf16.mxu1 %vm261_vm2, %v1284_v7  ;;  %v1290_v13 = vld [vmem:[%s1796_s0 + $0x98] sm:$0xff]   ;;  %v1291_v14 = vld [vmem:[%s1796_s0 + $0x20] sm:$0xff]   ;;  %v1293_v16 = vld [vmem:[%s1796_s0 + $0x28] sm:$0xff]  }
   0x5   :  { %1210 = vmatprep.subr.bf16.mxu0 %v363_v6  ;;  %1277 = vmatprep.subr.bf16.mxu1 %v363_v6  ;;  %v1292_v15 = vld [vmem:[%s1796_s0 + $0xa0] sm:$0xff]   ;;  %v1294_v17 = vld [vmem:[%s1796_s0 + $0xa8] sm:$0xff]   ;;  %v1295_v18 = vld [vmem:[%s1796_s0 + $0x30] sm:$0xff]  }
   0x6   :  { %v1296_v19 = vld [vmem:[%s1796_s0 + $0xb0] sm:$0xff]   ;;  %v1297_v20 = vld [vmem:[%s1796_s0 + $0x38] sm:$0xff]   ;;  %v1299_v22 = vld [vmem:[%s1796_s0 + $0x40] sm:$0xff]  }
   0x7   :  { %1211 = vmatpush3.bf16.msra.mxu0 %v363_v6  ;;  %1279 = vmatpush3.bf16.msra.mxu1 %v363_v6  ;;  %v1298_v21 = vld [vmem:[%s1796_s0 + $0xb8] sm:$0xff]   ;;  %v1300_v23 = vld [vmem:[%s1796_s0 + $0xc0] sm:$0xff]   ;;  %v1301_v24 = vld [vmem:[%s1796_s0 + $0x48] sm:$0xff]  }
   0x8   :  { %v1302_v25 = vld [vmem:[%s1796_s0 + $0xc8] sm:$0xff]   ;;  %v1303_v26 = vld [vmem:[%s1796_s0 + $0x50] sm:$0xff]   ;;  %v1305_v28 = vld [vmem:[%s1796_s0 + $0x58] sm:$0xff]  }
   0x9   :  { %v1304_v27 = vld [vmem:[%s1796_s0 + $0xd0] sm:$0xff]   ;;  %v1306_v29 = vld [vmem:[%s1796_s0 + $0xd8] sm:$0xff]   ;;  %v1307_v30 = vld [vmem:[%s1796_s0 + $0x60] sm:$0xff]  }
   0xa   :  { %1213 = vmatmul.mubr.msk.bf16.vlgmr.msra.gmra.mrb[0].mxu0 %vm261_vm2, %v1285_v8  ;;  %1245 = vmatmul.mubr.msk.bf16.vlgmr.msra.gmra.mrb[0].mxu1 %vm261_vm2, %v1286_v9  ;;  %v1308_v31 = vld [vmem:[%s1796_s0 + $0xe0] sm:$0xff]   ;;  %v1309_v32 = vld [vmem:[%s1796_s0 + $0x68] sm:$0xff]   ;;  %v1311_v34 = vld [vmem:[%s1796_s0 + $0x70] sm:$0xff]  }
   0xb   :  { %1216 = vmatprep.mubr.msk.bf16.mxu0 %vm261_vm2, %v1287_v10  ;;  %1248 = vmatprep.mubr.msk.bf16.mxu1 %vm261_vm2, %v1288_v11  ;;  %v1310_v33 = vld [vmem:[%s1796_s0 + $0xe8] sm:$0xff]   ;;  %v1312_v35 = vld [vmem:[%s1796_s0 + $0xf0] sm:$0xff]   ;;  %v1313_v36 = vld [vmem:[%s1796_s0 + $0x78] sm:$0xff]  }
   0xc   :  { %v1314_v37 = vld [vmem:[%s1796_s0 + $0xf8] sm:$0xff]   ;;  %v1473_v38 = vld [vmem:[%s1797_s2] ss:$0 sm:$0xff] }
  0x12   :  { %1217 = vmatmul.mubr.msk.bf16.gmra.mrb[4].mxu0 %vm261_vm2, %v1289_v12  ;;  %1249 = vmatmul.mubr.msk.bf16.gmra.mrb[4].mxu1 %vm261_vm2, %v1290_v13 }
  0x13   :  { %1220 = vmatprep.mubr.msk.bf16.mxu0 %vm261_vm2, %v1291_v14  ;;  %1252 = vmatprep.mubr.msk.bf16.mxu1 %vm261_vm2, %v1292_v15 }
  0x1a   :  { %1221 = vmatmul.mubr.msk.bf16.gmra.mrb[8].mxu0 %vm261_vm2, %v1293_v16  ;;  %1253 = vmatmul.mubr.msk.bf16.gmra.mrb[8].mxu1 %vm261_vm2, %v1294_v17 }
  0x1b   :  { %1224 = vmatprep.mubr.msk.bf16.mxu0 %vm261_vm2, %v1295_v18  ;;  %1256 = vmatprep.mubr.msk.bf16.mxu1 %vm261_vm2, %v1296_v19 }
  0x22   :  { %1225 = vmatmul.mubr.msk.bf16.gmra.mrb[12].mxu0 %vm261_vm2, %v1297_v20  ;;  %1257 = vmatmul.mubr.msk.bf16.gmra.mrb[12].mxu1 %vm261_vm2, %v1298_v21 }
  0x23   :  { %1228 = vmatprep.mubr.msk.bf16.mxu0 %vm261_vm2, %v1299_v22  ;;  %1260 = vmatprep.mubr.msk.bf16.mxu1 %vm261_vm2, %v1300_v23 }
  0x2a   :  { %1229 = vmatmul.mubr.msk.bf16.gmra.mrb[16].mxu0 %vm261_vm2, %v1301_v24  ;;  %1261 = vmatmul.mubr.msk.bf16.gmra.mrb[16].mxu1 %vm261_vm2, %v1302_v25 }
  0x2b   :  { %1232 = vmatprep.mubr.msk.bf16.mxu0 %vm261_vm2, %v1303_v26  ;;  %1264 = vmatprep.mubr.msk.bf16.mxu1 %vm261_vm2, %v1304_v27 }
  0x32   :  { %1233 = vmatmul.mubr.msk.bf16.gmra.mrb[20].mxu0 %vm261_vm2, %v1305_v28  ;;  %1265 = vmatmul.mubr.msk.bf16.gmra.mrb[20].mxu1 %vm261_vm2, %v1306_v29 }
  0x33   :  { %1236 = vmatprep.mubr.msk.bf16.mxu0 %vm261_vm2, %v1307_v30  ;;  %1268 = vmatprep.mubr.msk.bf16.mxu1 %vm261_vm2, %v1308_v31 }
  0x3a   :  { %1237 = vmatmul.mubr.msk.bf16.gmra.mrb[24].mxu0 %vm261_vm2, %v1309_v32  ;;  %1269 = vmatmul.mubr.msk.bf16.gmra.mrb[24].mxu1 %vm261_vm2, %v1310_v33 }
  0x3b   :  { %1240 = vmatprep.mubr.msk.bf16.mxu0 %vm261_vm2, %v1311_v34  ;;  %1272 = vmatprep.mubr.msk.bf16.mxu1 %vm261_vm2, %v1312_v35 }
  0x42   :  { %1241 = vmatmul.mubr.msk.bf16.gmra.mrb[28].mxu0 %vm261_vm2, %v1313_v36  ;;  %1273 = vmatmul.mubr.msk.bf16.gmra.mrb[28].mxu1 %vm261_vm2, %v1314_v37 }
  0xdd   :  { %v1214_v39 = vpop.f32.mrb[0].mxu0  ;;  %v1246_v40 = vpop.f32.mrb[0].mxu1 }
  0xde   :  { %v408_v41 = vadd.f32 %v1214_v39, %v1473_v38  ;;  %v536_v42 = vadd.f32 %v1246_v40, %v1473_v38  ;;  %v399_v43 = vpop.f32.mrb[1].mxu0  ;;  %v527_v44 = vpop.f32.mrb[1].mxu1 }
  0xdf   :  { %v400_v45 = vadd.f32 %v1473_v38, %v399_v43  ;;  %v528_v46 = vadd.f32 %v1473_v38, %v527_v44  ;;  %v1215_v47 = vpop.f32.mrb[2].mxu0  ;;  %v1247_v48 = vpop.f32.mrb[2].mxu1 }
  0xe0   :  { %v1112_v49 = vpack.c.bf16 %v408_v41, %v408_v41  ;;  %v1144_v50 = vpack.c.bf16 %v536_v42, %v536_v42  ;;  %v411_v51 = vadd.f32 %v1215_v47, %v1473_v38  ;;  %v539_v52 = vadd.f32 %v1247_v48, %v1473_v38  ;;  %v402_v53 = vpop.f32.mrb[3].mxu0  ;;  %v530_v54 = vpop.f32.mrb[3].mxu1 }
  0xe1   :  { %v1110_v55 = vpack.c.bf16 %v400_v45, %v400_v45  ;;  %v1142_v56 = vpack.c.bf16 %v528_v46, %v528_v46  ;;  %v403_v57 = vadd.f32 %v1473_v38, %v402_v53  ;;  %v531_v58 = vadd.f32 %v1473_v38, %v530_v54 }
  0xe2   :  { %913 = vst.msk [vmem:[%s1798_s3 + $0x8] sm:$0xf] %vm910_vm3, %v1112_v49  ;;  %945 = vst.msk [vmem:[%s1798_s3 + $0x88] sm:$0xf] %vm910_vm3, %v1144_v50  ;;  %v1113_v59 = vpack.c.bf16 %v411_v51, %v411_v51  ;;  %v1145_v60 = vpack.c.bf16 %v539_v52, %v539_v52 }
  0xe3   :  { %911 = vst.msk [vmem:[%s1798_s3] sm:$0xf] %vm910_vm3, %v1110_v55  ;;  %943 = vst.msk [vmem:[%s1798_s3 + $0x80] sm:$0xf] %vm910_vm3, %v1142_v56  ;;  %v1111_v61 = vpack.c.bf16 %v403_v57, %v403_v57  ;;  %v1143_v62 = vpack.c.bf16 %v531_v58, %v531_v58 }
  0xe4   :  { %914 = vst.msk [vmem:[%s1798_s3 + $0xc] sm:$0xf] %vm910_vm3, %v1113_v59  ;;  %946 = vst.msk [vmem:[%s1798_s3 + $0x8c] sm:$0xf] %vm910_vm3, %v1145_v60 }
  0xe5   :  { %912 = vst.msk [vmem:[%s1798_s3 + $0x4] sm:$0xf] %vm910_vm3, %v1111_v61  ;;  %944 = vst.msk [vmem:[%s1798_s3 + $0x84] sm:$0xf] %vm910_vm3, %v1143_v62  ;;  %v1218_v63 = vpop.f32.mrb[4].mxu0  ;;  %v1250_v0 = vpop.f32.mrb[4].mxu1 }
  0xe6   :  { %v424_v1 = vadd.f32 %v1218_v63, %v1473_v38  ;;  %v552_v2 = vadd.f32 %v1250_v0, %v1473_v38  ;;  %v415_v3 = vpop.f32.mrb[5].mxu0  ;;  %v543_v4 = vpop.f32.mrb[5].mxu1 }
  0xe7   :  { %v416_v5 = vadd.f32 %v1473_v38, %v415_v3  ;;  %v544_v6 = vadd.f32 %v1473_v38, %v543_v4  ;;  %v1219_v7 = vpop.f32.mrb[6].mxu0  ;;  %v1251_v8 = vpop.f32.mrb[6].mxu1 }
  0xe8   :  { %v1116_v9 = vpack.c.bf16 %v424_v1, %v424_v1  ;;  %v1148_v10 = vpack.c.bf16 %v552_v2, %v552_v2  ;;  %v427_v11 = vadd.f32 %v1219_v7, %v1473_v38  ;;  %v555_v12 = vadd.f32 %v1251_v8, %v1473_v38  ;;  %v418_v13 = vpop.f32.mrb[7].mxu0  ;;  %v546_v14 = vpop.f32.mrb[7].mxu1 }
  0xe9   :  { %v1114_v15 = vpack.c.bf16 %v416_v5, %v416_v5  ;;  %v1146_v16 = vpack.c.bf16 %v544_v6, %v544_v6  ;;  %v419_v17 = vadd.f32 %v1473_v38, %v418_v13  ;;  %v547_v18 = vadd.f32 %v1473_v38, %v546_v14 }
  0xea   :  { %917 = vst.msk [vmem:[%s1798_s3 + $0x18] sm:$0xf] %vm910_vm3, %v1116_v9  ;;  %949 = vst.msk [vmem:[%s1798_s3 + $0x98] sm:$0xf] %vm910_vm3, %v1148_v10  ;;  %v1117_v19 = vpack.c.bf16 %v427_v11, %v427_v11  ;;  %v1149_v20 = vpack.c.bf16 %v555_v12, %v555_v12 }
  0xeb   :  { %915 = vst.msk [vmem:[%s1798_s3 + $0x10] sm:$0xf] %vm910_vm3, %v1114_v15  ;;  %947 = vst.msk [vmem:[%s1798_s3 + $0x90] sm:$0xf] %vm910_vm3, %v1146_v16  ;;  %v1115_v21 = vpack.c.bf16 %v419_v17, %v419_v17  ;;  %v1147_v22 = vpack.c.bf16 %v547_v18, %v547_v18 }
  0xec   :  { %918 = vst.msk [vmem:[%s1798_s3 + $0x1c] sm:$0xf] %vm910_vm3, %v1117_v19  ;;  %950 = vst.msk [vmem:[%s1798_s3 + $0x9c] sm:$0xf] %vm910_vm3, %v1149_v20 }
  0xed   :  { %916 = vst.msk [vmem:[%s1798_s3 + $0x14] sm:$0xf] %vm910_vm3, %v1115_v21  ;;  %948 = vst.msk [vmem:[%s1798_s3 + $0x94] sm:$0xf] %vm910_vm3, %v1147_v22  ;;  %v1222_v23 = vpop.f32.mrb[8].mxu0  ;;  %v1254_v24 = vpop.f32.mrb[8].mxu1 }
  0xee   :  { %v440_v25 = vadd.f32 %v1222_v23, %v1473_v38  ;;  %v568_v26 = vadd.f32 %v1254_v24, %v1473_v38  ;;  %v431_v27 = vpop.f32.mrb[9].mxu0  ;;  %v559_v28 = vpop.f32.mrb[9].mxu1 }
  0xef   :  { %v432_v29 = vadd.f32 %v1473_v38, %v431_v27  ;;  %v560_v30 = vadd.f32 %v1473_v38, %v559_v28  ;;  %v1223_v31 = vpop.f32.mrb[10].mxu0  ;;  %v1255_v32 = vpop.f32.mrb[10].mxu1 }
  0xf0   :  { %v1120_v33 = vpack.c.bf16 %v440_v25, %v440_v25  ;;  %v1152_v34 = vpack.c.bf16 %v568_v26, %v568_v26  ;;  %v443_v35 = vadd.f32 %v1223_v31, %v1473_v38  ;;  %v571_v36 = vadd.f32 %v1255_v32, %v1473_v38  ;;  %v434_v37 = vpop.f32.mrb[11].mxu0  ;;  %v562_v39 = vpop.f32.mrb[11].mxu1 }
  0xf1   :  { %v1118_v40 = vpack.c.bf16 %v432_v29, %v432_v29  ;;  %v1150_v41 = vpack.c.bf16 %v560_v30, %v560_v30  ;;  %v435_v42 = vadd.f32 %v1473_v38, %v434_v37  ;;  %v563_v43 = vadd.f32 %v1473_v38, %v562_v39 }
  0xf2   :  { %921 = vst.msk [vmem:[%s1798_s3 + $0x28] sm:$0xf] %vm910_vm3, %v1120_v33  ;;  %953 = vst.msk [vmem:[%s1798_s3 + $0xa8] sm:$0xf] %vm910_vm3, %v1152_v34  ;;  %v1121_v44 = vpack.c.bf16 %v443_v35, %v443_v35  ;;  %v1153_v45 = vpack.c.bf16 %v571_v36, %v571_v36 }
  0xf3   :  { %919 = vst.msk [vmem:[%s1798_s3 + $0x20] sm:$0xf] %vm910_vm3, %v1118_v40  ;;  %951 = vst.msk [vmem:[%s1798_s3 + $0xa0] sm:$0xf] %vm910_vm3, %v1150_v41  ;;  %v1119_v46 = vpack.c.bf16 %v435_v42, %v435_v42  ;;  %v1151_v47 = vpack.c.bf16 %v563_v43, %v563_v43 }
  0xf4   :  { %922 = vst.msk [vmem:[%s1798_s3 + $0x2c] sm:$0xf] %vm910_vm3, %v1121_v44  ;;  %954 = vst.msk [vmem:[%s1798_s3 + $0xac] sm:$0xf] %vm910_vm3, %v1153_v45 }
  0xf5   :  { %920 = vst.msk [vmem:[%s1798_s3 + $0x24] sm:$0xf] %vm910_vm3, %v1119_v46  ;;  %952 = vst.msk [vmem:[%s1798_s3 + $0xa4] sm:$0xf] %vm910_vm3, %v1151_v47  ;;  %v1226_v48 = vpop.f32.mrb[12].mxu0  ;;  %v1258_v49 = vpop.f32.mrb[12].mxu1 }
  0xf6   :  { %v456_v50 = vadd.f32 %v1226_v48, %v1473_v38  ;;  %v584_v51 = vadd.f32 %v1258_v49, %v1473_v38  ;;  %v447_v52 = vpop.f32.mrb[13].mxu0  ;;  %v575_v53 = vpop.f32.mrb[13].mxu1 }
  0xf7   :  { %v448_v54 = vadd.f32 %v1473_v38, %v447_v52  ;;  %v576_v55 = vadd.f32 %v1473_v38, %v575_v53  ;;  %v1227_v56 = vpop.f32.mrb[14].mxu0  ;;  %v1259_v57 = vpop.f32.mrb[14].mxu1 }
  0xf8   :  { %v1124_v58 = vpack.c.bf16 %v456_v50, %v456_v50  ;;  %v1156_v59 = vpack.c.bf16 %v584_v51, %v584_v51  ;;  %v459_v60 = vadd.f32 %v1227_v56, %v1473_v38  ;;  %v587_v61 = vadd.f32 %v1259_v57, %v1473_v38  ;;  %v450_v62 = vpop.f32.mrb[15].mxu0  ;;  %v578_v63 = vpop.f32.mrb[15].mxu1 }
  0xf9   :  { %v1122_v0 = vpack.c.bf16 %v448_v54, %v448_v54  ;;  %v1154_v1 = vpack.c.bf16 %v576_v55, %v576_v55  ;;  %v451_v2 = vadd.f32 %v1473_v38, %v450_v62  ;;  %v579_v3 = vadd.f32 %v1473_v38, %v578_v63 }
  0xfa   :  { %925 = vst.msk [vmem:[%s1798_s3 + $0x38] sm:$0xf] %vm910_vm3, %v1124_v58  ;;  %957 = vst.msk [vmem:[%s1798_s3 + $0xb8] sm:$0xf] %vm910_vm3, %v1156_v59  ;;  %v1125_v4 = vpack.c.bf16 %v459_v60, %v459_v60  ;;  %v1157_v5 = vpack.c.bf16 %v587_v61, %v587_v61 }
  0xfb   :  { %923 = vst.msk [vmem:[%s1798_s3 + $0x30] sm:$0xf] %vm910_vm3, %v1122_v0  ;;  %955 = vst.msk [vmem:[%s1798_s3 + $0xb0] sm:$0xf] %vm910_vm3, %v1154_v1  ;;  %v1123_v6 = vpack.c.bf16 %v451_v2, %v451_v2  ;;  %v1155_v7 = vpack.c.bf16 %v579_v3, %v579_v3 }
  0xfc   :  { %926 = vst.msk [vmem:[%s1798_s3 + $0x3c] sm:$0xf] %vm910_vm3, %v1125_v4  ;;  %958 = vst.msk [vmem:[%s1798_s3 + $0xbc] sm:$0xf] %vm910_vm3, %v1157_v5 }
  0xfd   :  { %924 = vst.msk [vmem:[%s1798_s3 + $0x34] sm:$0xf] %vm910_vm3, %v1123_v6  ;;  %956 = vst.msk [vmem:[%s1798_s3 + $0xb4] sm:$0xf] %vm910_vm3, %v1155_v7  ;;  %v1230_v8 = vpop.f32.mrb[16].mxu0  ;;  %v1262_v9 = vpop.f32.mrb[16].mxu1 }
  0xfe   :  { %v472_v10 = vadd.f32 %v1230_v8, %v1473_v38  ;;  %v600_v11 = vadd.f32 %v1262_v9, %v1473_v38  ;;  %v463_v12 = vpop.f32.mrb[17].mxu0  ;;  %v591_v13 = vpop.f32.mrb[17].mxu1 }
  0xff   :  { %v464_v14 = vadd.f32 %v1473_v38, %v463_v12  ;;  %v592_v15 = vadd.f32 %v1473_v38, %v591_v13  ;;  %v1231_v16 = vpop.f32.mrb[18].mxu0  ;;  %v1263_v17 = vpop.f32.mrb[18].mxu1 }
 0x100   :  { %v1128_v18 = vpack.c.bf16 %v472_v10, %v472_v10  ;;  %v1160_v19 = vpack.c.bf16 %v600_v11, %v600_v11  ;;  %v475_v20 = vadd.f32 %v1231_v16, %v1473_v38  ;;  %v603_v21 = vadd.f32 %v1263_v17, %v1473_v38  ;;  %v466_v22 = vpop.f32.mrb[19].mxu0  ;;  %v594_v23 = vpop.f32.mrb[19].mxu1 }
 0x101   :  { %v1126_v24 = vpack.c.bf16 %v464_v14, %v464_v14  ;;  %v1158_v25 = vpack.c.bf16 %v592_v15, %v592_v15  ;;  %v467_v26 = vadd.f32 %v1473_v38, %v466_v22  ;;  %v595_v27 = vadd.f32 %v1473_v38, %v594_v23 }
 0x102   :  { %929 = vst.msk [vmem:[%s1798_s3 + $0x48] sm:$0xf] %vm910_vm3, %v1128_v18  ;;  %961 = vst.msk [vmem:[%s1798_s3 + $0xc8] sm:$0xf] %vm910_vm3, %v1160_v19  ;;  %v1129_v28 = vpack.c.bf16 %v475_v20, %v475_v20  ;;  %v1161_v29 = vpack.c.bf16 %v603_v21, %v603_v21 }
 0x103   :  { %927 = vst.msk [vmem:[%s1798_s3 + $0x40] sm:$0xf] %vm910_vm3, %v1126_v24  ;;  %959 = vst.msk [vmem:[%s1798_s3 + $0xc0] sm:$0xf] %vm910_vm3, %v1158_v25  ;;  %v1127_v30 = vpack.c.bf16 %v467_v26, %v467_v26  ;;  %v1159_v31 = vpack.c.bf16 %v595_v27, %v595_v27 }
 0x104   :  { %930 = vst.msk [vmem:[%s1798_s3 + $0x4c] sm:$0xf] %vm910_vm3, %v1129_v28  ;;  %962 = vst.msk [vmem:[%s1798_s3 + $0xcc] sm:$0xf] %vm910_vm3, %v1161_v29 }
 0x105   :  { %928 = vst.msk [vmem:[%s1798_s3 + $0x44] sm:$0xf] %vm910_vm3, %v1127_v30  ;;  %960 = vst.msk [vmem:[%s1798_s3 + $0xc4] sm:$0xf] %vm910_vm3, %v1159_v31  ;;  %v1234_v32 = vpop.f32.mrb[20].mxu0  ;;  %v1266_v33 = vpop.f32.mrb[20].mxu1 }
 0x106   :  { %v488_v34 = vadd.f32 %v1234_v32, %v1473_v38  ;;  %v616_v35 = vadd.f32 %v1266_v33, %v1473_v38  ;;  %v479_v36 = vpop.f32.mrb[21].mxu0  ;;  %v607_v37 = vpop.f32.mrb[21].mxu1 }
 0x107   :  { %v480_v39 = vadd.f32 %v1473_v38, %v479_v36  ;;  %v608_v40 = vadd.f32 %v1473_v38, %v607_v37  ;;  %v1235_v41 = vpop.f32.mrb[22].mxu0  ;;  %v1267_v42 = vpop.f32.mrb[22].mxu1 }
 0x108   :  { %v1132_v43 = vpack.c.bf16 %v488_v34, %v488_v34  ;;  %v1164_v44 = vpack.c.bf16 %v616_v35, %v616_v35  ;;  %v491_v45 = vadd.f32 %v1235_v41, %v1473_v38  ;;  %v619_v46 = vadd.f32 %v1267_v42, %v1473_v38  ;;  %v482_v47 = vpop.f32.mrb[23].mxu0  ;;  %v610_v48 = vpop.f32.mrb[23].mxu1 }
 0x109   :  { %v1130_v49 = vpack.c.bf16 %v480_v39, %v480_v39  ;;  %v1162_v50 = vpack.c.bf16 %v608_v40, %v608_v40  ;;  %v483_v51 = vadd.f32 %v1473_v38, %v482_v47  ;;  %v611_v52 = vadd.f32 %v1473_v38, %v610_v48 }
 0x10a   :  { %933 = vst.msk [vmem:[%s1798_s3 + $0x58] sm:$0xf] %vm910_vm3, %v1132_v43  ;;  %965 = vst.msk [vmem:[%s1798_s3 + $0xd8] sm:$0xf] %vm910_vm3, %v1164_v44  ;;  %v1133_v53 = vpack.c.bf16 %v491_v45, %v491_v45  ;;  %v1165_v54 = vpack.c.bf16 %v619_v46, %v619_v46 }
 0x10b   :  { %931 = vst.msk [vmem:[%s1798_s3 + $0x50] sm:$0xf] %vm910_vm3, %v1130_v49  ;;  %963 = vst.msk [vmem:[%s1798_s3 + $0xd0] sm:$0xf] %vm910_vm3, %v1162_v50  ;;  %v1131_v55 = vpack.c.bf16 %v483_v51, %v483_v51  ;;  %v1163_v56 = vpack.c.bf16 %v611_v52, %v611_v52 }
 0x10c   :  { %934 = vst.msk [vmem:[%s1798_s3 + $0x5c] sm:$0xf] %vm910_vm3, %v1133_v53  ;;  %966 = vst.msk [vmem:[%s1798_s3 + $0xdc] sm:$0xf] %vm910_vm3, %v1165_v54 }
 0x10d   :  { %932 = vst.msk [vmem:[%s1798_s3 + $0x54] sm:$0xf] %vm910_vm3, %v1131_v55  ;;  %964 = vst.msk [vmem:[%s1798_s3 + $0xd4] sm:$0xf] %vm910_vm3, %v1163_v56  ;;  %v1238_v57 = vpop.f32.mrb[24].mxu0  ;;  %v1270_v58 = vpop.f32.mrb[24].mxu1 }
 0x10e   :  { %v504_v59 = vadd.f32 %v1238_v57, %v1473_v38  ;;  %v632_v60 = vadd.f32 %v1270_v58, %v1473_v38  ;;  %v495_v61 = vpop.f32.mrb[25].mxu0  ;;  %v623_v62 = vpop.f32.mrb[25].mxu1 }
 0x10f   :  { %v496_v63 = vadd.f32 %v1473_v38, %v495_v61  ;;  %v624_v0 = vadd.f32 %v1473_v38, %v623_v62  ;;  %v1239_v1 = vpop.f32.mrb[26].mxu0  ;;  %v1271_v2 = vpop.f32.mrb[26].mxu1 }
 0x110   :  { %v1136_v3 = vpack.c.bf16 %v504_v59, %v504_v59  ;;  %v1168_v4 = vpack.c.bf16 %v632_v60, %v632_v60  ;;  %v507_v5 = vadd.f32 %v1239_v1, %v1473_v38  ;;  %v635_v6 = vadd.f32 %v1271_v2, %v1473_v38  ;;  %v498_v7 = vpop.f32.mrb[27].mxu0  ;;  %v626_v8 = vpop.f32.mrb[27].mxu1 }
 0x111   :  { %v1134_v9 = vpack.c.bf16 %v496_v63, %v496_v63  ;;  %v1166_v10 = vpack.c.bf16 %v624_v0, %v624_v0  ;;  %v499_v11 = vadd.f32 %v1473_v38, %v498_v7  ;;  %v627_v12 = vadd.f32 %v1473_v38, %v626_v8 }
 0x112   :  { %937 = vst.msk [vmem:[%s1798_s3 + $0x68] sm:$0xf] %vm910_vm3, %v1136_v3  ;;  %969 = vst.msk [vmem:[%s1798_s3 + $0xe8] sm:$0xf] %vm910_vm3, %v1168_v4  ;;  %v1137_v13 = vpack.c.bf16 %v507_v5, %v507_v5  ;;  %v1169_v14 = vpack.c.bf16 %v635_v6, %v635_v6 }
 0x113   :  { %935 = vst.msk [vmem:[%s1798_s3 + $0x60] sm:$0xf] %vm910_vm3, %v1134_v9  ;;  %967 = vst.msk [vmem:[%s1798_s3 + $0xe0] sm:$0xf] %vm910_vm3, %v1166_v10  ;;  %v1135_v15 = vpack.c.bf16 %v499_v11, %v499_v11  ;;  %v1167_v16 = vpack.c.bf16 %v627_v12, %v627_v12 }
 0x114   :  { %938 = vst.msk [vmem:[%s1798_s3 + $0x6c] sm:$0xf] %vm910_vm3, %v1137_v13  ;;  %970 = vst.msk [vmem:[%s1798_s3 + $0xec] sm:$0xf] %vm910_vm3, %v1169_v14 }
 0x115   :  { %936 = vst.msk [vmem:[%s1798_s3 + $0x64] sm:$0xf] %vm910_vm3, %v1135_v15  ;;  %968 = vst.msk [vmem:[%s1798_s3 + $0xe4] sm:$0xf] %vm910_vm3, %v1167_v16  ;;  %v1242_v17 = vpop.f32.mrb[28].mxu0  ;;  %v1274_v18 = vpop.f32.mrb[28].mxu1 }
 0x116   :  { %v520_v19 = vadd.f32 %v1242_v17, %v1473_v38  ;;  %v648_v20 = vadd.f32 %v1274_v18, %v1473_v38  ;;  %v511_v21 = vpop.f32.mrb[29].mxu0  ;;  %v639_v22 = vpop.f32.mrb[29].mxu1 }
 0x117   :  { %v512_v23 = vadd.f32 %v1473_v38, %v511_v21  ;;  %v640_v24 = vadd.f32 %v1473_v38, %v639_v22  ;;  %v1243_v25 = vpop.f32.mrb[30].mxu0  ;;  %v1275_v26 = vpop.f32.mrb[30].mxu1 }
 0x118   :  { %v1140_v27 = vpack.c.bf16 %v520_v19, %v520_v19  ;;  %v1172_v28 = vpack.c.bf16 %v648_v20, %v648_v20  ;;  %v523_v29 = vadd.f32 %v1243_v25, %v1473_v38  ;;  %v651_v30 = vadd.f32 %v1275_v26, %v1473_v38  ;;  %v514_v31 = vpop.f32.mrb[31].mxu0  ;;  %v642_v32 = vpop.f32.mrb[31].mxu1 }
 0x119   :  { %v1138_v33 = vpack.c.bf16 %v512_v23, %v512_v23  ;;  %v1170_v34 = vpack.c.bf16 %v640_v24, %v640_v24  ;;  %v515_v35 = vadd.f32 %v1473_v38, %v514_v31  ;;  %v643_v36 = vadd.f32 %v1473_v38, %v642_v32 }
 0x11a   :  { %941 = vst.msk [vmem:[%s1798_s3 + $0x78] sm:$0xf] %vm910_vm3, %v1140_v27  ;;  %973 = vst.msk [vmem:[%s1798_s3 + $0xf8] sm:$0xf] %vm910_vm3, %v1172_v28  ;;  %v1141_v37 = vpack.c.bf16 %v523_v29, %v523_v29  ;;  %v1173_v39 = vpack.c.bf16 %v651_v30, %v651_v30 }
 0x11b   :  { %939 = vst.msk [vmem:[%s1798_s3 + $0x70] sm:$0xf] %vm910_vm3, %v1138_v33  ;;  %971 = vst.msk [vmem:[%s1798_s3 + $0xf0] sm:$0xf] %vm910_vm3, %v1170_v34  ;;  %v1139_v38 = vpack.c.bf16 %v515_v35, %v515_v35  ;;  %v1171_v40 = vpack.c.bf16 %v643_v36, %v643_v36 }
 0x11c   :  { %942 = vst.msk [vmem:[%s1798_s3 + $0x7c] sm:$0xf] %vm910_vm3, %v1141_v37  ;;  %974 = vst.msk [vmem:[%s1798_s3 + $0xfc] sm:$0xf] %vm910_vm3, %v1173_v39 }
 0x11d   :  { %940 = vst.msk [vmem:[%s1798_s3 + $0x74] sm:$0xf] %vm910_vm3, %v1139_v38  ;;  %972 = vst.msk [vmem:[%s1798_s3 + $0xf4] sm:$0xf] %vm910_vm3, %v1171_v40 }

// kernel: liif_forward.3
= control target key start
LH: loop header
LB: loop body
LE: loop exit
PB: predicated region body
PF: predicated region fallthrough
CT: control target
= control target key end

     0   :  { %s2130_s27 = smov 0   ;;  %s2132_s28 = smov 0   ;;  %s2400_s0 = inlined_call_operand.vmem [shape: bf16[2,4,64,80], index: 0, kind: input, shape index: {}]   ;;  %s2401_s1 = inlined_call_operand.vmem [shape: f32[2,64,4], index: 1, kind: input, shape index: {}]   ;;  %s2402_s2 = inlined_call_operand.vmem [shape: bf16[80,128], index: 2, kind: input, shape index: {}]   ;;  %s2403_s3 = inlined_call_operand.vmem [shape: f32[1,128], index: 3, kind: input, shape index: {}]   ;;  %s2404_s4 = inlined_call_operand.vmem [shape: bf16[128,128], index: 4, kind: input, shape index: {}]   ;;  %s2405_s5 = inlined_call_operand.vmem [shape: f32[1,128], index: 5, kind: input, shape index: {}]   ;;  %s2406_s6 = inlined_call_operand.vmem [shape: bf16[128,128], index: 6, kind: input, shape index: {}]   ;;  %s2407_s7 = inlined_call_operand.vmem [shape: f32[1,128], index: 7, kind: input, shape index: {}]   ;;  %s2408_s8 = inlined_call_operand.vmem [shape: bf16[2,64,128], index: 8, kind: output, shape index: {}]  }
   0x1   :  { %s2134_s29 = smov 0  }
   0x2 LB: > { %s30_s30 = sadd.s32 1, %s2075_s28  ;;  %p1660_p0 = scmp.ge.s32.totalorder %s2079_s29, 1  ;;  %s2079_s29 = sphi %s2134_s29, %s18_s29   ;;  %s2075_s28 = sphi %s2132_s28, %s2410_s28   ;;  %s2071_s27 = sphi %s2130_s27, %s2409_s27  }
   0x3   : > { %p32_p1 = scmp.ge.s32.totalorder %s30_s30, 2  ;;  %p300_p2 = scmp.lt.s32.totalorder %s2079_s29, 3 }
   0x5   : > { %s2412_s30 = smov (%p32_p1, %s30_s30), 0  ;;  %p301_p3 = pnand %p1660_p0, %p300_p2 }
   0x6   : > { %v2020_v0 = vld [vmem:[%s2402_s2] sm:$0xff] (!%p301_p3)   ;;  %p352_p4 = scmp.lt.s32.totalorder (!%p301_p3), %s2071_s27, 1  ;;  %v2021_v1 = vld [vmem:[%s2402_s2 + $0x8] sm:$0xff] (!%p301_p3)   ;;  %v2022_v2 = vld [vmem:[%s2402_s2 + $0x10] sm:$0xff] (!%p301_p3)   ;;  %vm541_vm0 = vcmask (!%p301_p3), 654336  }
   0x7   : > { %304 = sbr.rel (%p301_p3) target bundleno = 751 (0x2ef), region = 52  ;;  %1836 = vmatprep.subr.bf16.mxu0 (!%p301_p3), %v2020_v0  ;;  %1974 = vmatprep.subr.bf16.mxu1 (!%p301_p3), %v2020_v0  ;;  %v2023_v4 = vld [vmem:[%s2402_s2 + $0x18] sm:$0xff] (!%p301_p3)   ;;  %v2024_v5 = vld [vmem:[%s2402_s2 + $0x20] sm:$0xff] (!%p301_p3)   ;;  %v2042_v12 = vld [vmem:[%s2404_s4 + $0x8] sm:$0xff] (!%p301_p3)  }
   0x8   : > { %1837 = vmatpush3.bf16.msra.mxu0 (!%p301_p3), %v2020_v0  ;;  %1979 = vmatpush3.bf16.msra.mxu1 (!%p301_p3), %v2020_v0  ;;  %v2041_v7 = vld [vmem:[%s2404_s4] sm:$0xff] (!%p301_p3)   ;;  %v2043_v16 = vld [vmem:[%s2404_s4 + $0x10] sm:$0xff] (!%p301_p3)   ;;  %v2044_v18 = vld [vmem:[%s2404_s4 + $0x18] sm:$0xff] (!%p301_p3)  }
   0x9   : > { %1838 = vmatprep.subr.bf16.mxu0 (!%p301_p3), %v2021_v1  ;;  %1975 = vmatprep.subr.bf16.mxu1 (!%p301_p3), %v2021_v1  ;;  %v2045_v19 = vld [vmem:[%s2404_s4 + $0x20] sm:$0xff] (!%p301_p3)   ;;  %v2046_v24 = vld [vmem:[%s2404_s4 + $0x28] sm:$0xff] (!%p301_p3)   ;;  %v2047_v27 = vld [vmem:[%s2404_s4 + $0x30] sm:$0xff] (!%p301_p3)  }
   0xa   : > { %v2048_v28 = vld [vmem:[%s2404_s4 + $0x38] sm:$0xff] (!%p301_p3)   ;;  %v2049_v29 = vld [vmem:[%s2406_s6] sm:$0xff] (!%p301_p3)   ;;  %v2050_v30 = vld [vmem:[%s2406_s6 + $0x8] sm:$0xff] (!%p301_p3)  }
   0xb   : > { %v2051_v31 = vld [vmem:[%s2406_s6 + $0x10] sm:$0xff] (!%p301_p3)   ;;  %v2052_v32 = vld [vmem:[%s2406_s6 + $0x18] sm:$0xff] (!%p301_p3)   ;;  %v2053_v33 = vld [vmem:[%s2406_s6 + $0x20] sm:$0xff] (!%p301_p3)  }
   0xc   : > { %1839 = vmatpush3.bf16.msra.mxu0 (!%p301_p3), %v2021_v1  ;;  %1980 = vmatpush3.bf16.msra.mxu1 (!%p301_p3), %v2021_v1  ;;  %v2054_v34 = vld [vmem:[%s2406_s6 + $0x28] sm:$0xff] (!%p301_p3)   ;;  %v2248_v35 = vld [vmem:[%s2403_s3] ss:$0 sm:$0xff] (!%p301_p3) }
   0xd   : > { %1840 = vmatprep.subr.bf16.mxu0 (!%p301_p3), %v2022_v2  ;;  %1976 = vmatprep.subr.bf16.mxu1 (!%p301_p3), %v2022_v2 }
   0xe   : > { %s2414_s27 = smov (!%p352_p4, %s2071_s27), 1 }
   0xf   : > { %s1733_s15 = sshll.u32 %s2414_s27, 7  ;;  %s1734_s22 = sshll.u32 %s2414_s27, 6 }
  0x10   : > { %s2163_s18 = scalar_lea.vmem %s2400_s0, %s1733_s15  ;;  %1841 = vmatpush3.bf16.msra.mxu0 %v2022_v2  ;;  %1981 = vmatpush3.bf16.msra.mxu1 %v2022_v2  ;;  %s369_s24 = scalar_lea.vmem %s2401_s1, %s1734_s22 }
  0x11   : > { %v2025_v3 = vld [vmem:[%s2163_s18] sm:$0xff]   ;;  %1842 = vmatprep.subr.bf16.mxu0 %v2023_v4  ;;  %1977 = vmatprep.subr.bf16.mxu1 %v2023_v4  ;;  %v2026_v8 = vld [vmem:[%s2163_s18 + $0x8] sm:$0xff]   ;;  %v2027_v9 = vld [vmem:[%s2163_s18 + $0x10] sm:$0xff]   ;;  %s1735_s11 = sshll.u32 %s2414_s27, 5 }
  0x12   : > { %1846 = vmatprep.mubr.msk.bf16.mxu0 %vm541_vm0, %v2025_v3  ;;  %v2033_v6 = vld [vmem:[%s2163_s18 + $0x40] sm:$0xff]   ;;  %v2034_v10 = vld [vmem:[%s2163_s18 + $0x48] sm:$0xff]   ;;  %v2035_v11 = vld [vmem:[%s2163_s18 + $0x50] sm:$0xff]   ;;  %s379_s14 = scalar_lea.vmem %s2408_s8, %s1735_s11 }
  0x13   : > { %1862 = vmatprep.mubr.msk.bf16.mxu1 %vm541_vm0, %v2033_v6  ;;  %v2028_v13 = vld [vmem:[%s2163_s18 + $0x18] sm:$0xff]   ;;  %v2029_v15 = vld [vmem:[%s2163_s18 + $0x20] sm:$0xff]   ;;  %v2030_v20 = vld [vmem:[%s2163_s18 + $0x28] sm:$0xff]  }
  0x14   : > { %1843 = vmatpush3.bf16.msra.mxu0 %v2023_v4  ;;  %1982 = vmatpush3.bf16.msra.mxu1 %v2023_v4  ;;  %v2036_v14 = vld [vmem:[%s2163_s18 + $0x58] sm:$0xff]   ;;  %v2037_v17 = vld [vmem:[%s2163_s18 + $0x60] sm:$0xff]   ;;  %v2038_v21 = vld [vmem:[%s2163_s18 + $0x68] sm:$0xff]  }
  0x15   : > { %1844 = vmatprep.subr.bf16.mxu0 %v2024_v5  ;;  %1978 = vmatprep.subr.bf16.mxu1 %v2024_v5  ;;  %v2031_v22 = vld [vmem:[%s2163_s18 + $0x30] sm:$0xff]   ;;  %v2032_v25 = vld [vmem:[%s2163_s18 + $0x38] sm:$0xff]  }
  0x16   : > { %v2039_v23 = vld [vmem:[%s2163_s18 + $0x70] sm:$0xff]   ;;  %v2040_v26 = vld [vmem:[%s2163_s18 + $0x78] sm:$0xff]  }
  0x18   : > { %1845 = vmatpush3.bf16.msra.mxu0 %v2024_v5  ;;  %1983 = vmatpush3.bf16.msra.mxu1 %v2024_v5 }
  0x19   : > { %1878 = vmatprep.subr.bf16.mxu1 %v2041_v7  ;;  %1926 = vmatprep.subr.bf16.mxu0 %v2049_v29 }
  0x1b   : > { %1847 = vmatmul.mubr.msk.bf16.vlgmr.msra.gmra.mrb[0].mxu0 %vm541_vm0, %v2026_v8  ;;  %1863 = vmatmul.mubr.msk.bf16.vlgmr.msra.gmra.mrb[0].mxu1 %vm541_vm0, %v2034_v10 }
  0x1c   : > { %1850 = vmatprep.mubr.msk.bf16.mxu0 %vm541_vm0, %v2027_v9  ;;  %1866 = vmatprep.mubr.msk.bf16.mxu1 %vm541_vm0, %v2035_v11 }
  0x1d   : > { %1879 = vmatpush3.bf16.msra.mxu1 %v2041_v7  ;;  %1927 = vmatpush3.bf16.msra.mxu0 %v2049_v29 }
  0x1e   : > { %1880 = vmatprep.subr.bf16.mxu1 %v2042_v12  ;;  %1928 = vmatprep.subr.bf16.mxu0 %v2050_v30 }
  0x21   : > { %1881 = vmatpush3.bf16.msra.mxu1 %v2042_v12  ;;  %1929 = vmatpush3.bf16.msra.mxu0 %v2050_v30 }
  0x22   : > { %1882 = vmatprep.subr.bf16.mxu1 %v2043_v16  ;;  %1930 = vmatprep.subr.bf16.mxu0 %v2051_v31 }
  0x23   : > { %1851 = vmatmul.mubr.msk.bf16.gmra.mrb[4].mxu0 %vm541_vm0, %v2028_v13  ;;  %1867 = vmatmul.mubr.msk.bf16.gmra.mrb[4].mxu1 %vm541_vm0, %v2036_v14 }
  0x24   : > { %1854 = vmatprep.mubr.msk.bf16.mxu0 %vm541_vm0, %v2029_v15  ;;  %1870 = vmatprep.mubr.msk.bf16.mxu1 %vm541_vm0, %v2037_v17 }
  0x25   : > { %1883 = vmatpush3.bf16.msra.mxu1 %v2043_v16  ;;  %1931 = vmatpush3.bf16.msra.mxu0 %v2051_v31 }
  0x26   : > { %1884 = vmatprep.subr.bf16.mxu1 %v2044_v18  ;;  %1932 = vmatprep.subr.bf16.mxu0 %v2052_v32 }
  0x29   : > { %1885 = vmatpush3.bf16.msra.mxu1 %v2044_v18  ;;  %1933 = vmatpush3.bf16.msra.mxu0 %v2052_v32 }
  0x2a   : > { %1886 = vmatprep.subr.bf16.mxu1 %v2045_v19  ;;  %1934 = vmatprep.subr.bf16.mxu0 %v2053_v33 }
  0x2b   : > { %1855 = vmatmul.mubr.msk.bf16.gmra.mrb[8].mxu0 %vm541_vm0, %v2030_v20  ;;  %1871 = vmatmul.mubr.msk.bf16.gmra.mrb[8].mxu1 %vm541_vm0, %v2038_v21 }
  0x2c   : > { %1858 = vmatprep.mubr.msk.bf16.mxu0 %vm541_vm0, %v2031_v22  ;;  %1874 = vmatprep.mubr.msk.bf16.mxu1 %vm541_vm0, %v2039_v23 }
  0x2d   : > { %1887 = vmatpush3.bf16.msra.mxu1 %v2045_v19  ;;  %1935 = vmatpush3.bf16.msra.mxu0 %v2053_v33 }
  0x2e   : > { %1888 = vmatprep.subr.bf16.mxu1 %v2046_v24  ;;  %1936 = vmatprep.subr.bf16.mxu0 %v2054_v34 }
  0x31   : > { %1889 = vmatpush3.bf16.msra.mxu1 %v2046_v24  ;;  %1937 = vmatpush3.bf16.msra.mxu0 %v2054_v34 }
  0x32   : > { %1890 = vmatprep.subr.bf16.mxu1 %v2047_v27 }
  0x33   : > { %1859 = vmatmul.mubr.msk.bf16.gmra.mrb[12].mxu0 %vm541_vm0, %v2032_v25  ;;  %1875 = vmatmul.mubr.msk.bf16.gmra.mrb[12].mxu1 %vm541_vm0, %v2040_v26 }
  0x35   : > { %1891 = vmatpush3.bf16.msra.mxu1 %v2047_v27 }
  0x36   : > { %1892 = vmatprep.subr.bf16.mxu1 %v2048_v28 }
  0x39   : > { %1893 = vmatpush3.bf16.msra.mxu1 %v2048_v28 }
  0xee   : > { %v1848_v36 = vpop.f32.mrb[0].mxu0  ;;  %v1864_v37 = vpop.f32.mrb[0].mxu1 }
  0xef   : > { %v633_v38 = vadd.f32 %v1848_v36, %v2248_v35  ;;  %v624_v39 = vpop.f32.mrb[1].mxu0  ;;  %v697_v40 = vadd.f32 %v1864_v37, %v2248_v35  ;;  %v688_v41 = vpop.f32.mrb[1].mxu1 }
  0xf0   : > { %v625_v42 = vadd.f32 %v2248_v35, %v624_v39  ;;  %v1849_v43 = vpop.f32.mrb[2].mxu0  ;;  %v689_v44 = vadd.f32 %v2248_v35, %v688_v41  ;;  %v1865_v45 = vpop.f32.mrb[2].mxu1 }
  0xf1   : > { %v636_v46 = vadd.f32 %v1849_v43, %v2248_v35  ;;  %v627_v47 = vpop.f32.mrb[3].mxu0  ;;  %v769_v48 = vmax.f32 %v697_v40, 0.0  ;;  %v700_v49 = vadd.f32 %v1865_v45, %v2248_v35  ;;  %v691_v50 = vpop.f32.mrb[3].mxu1  ;;  %v753_v54 = vmax.f32 %v633_v38, 0.0 }
  0xf2   : > { %v628_v51 = vadd.f32 %v2248_v35, %v627_v47  ;;  %v767_v52 = vmax.f32 %v689_v44, 0.0  ;;  %v692_v53 = vadd.f32 %v2248_v35, %v691_v50  ;;  %v751_v57 = vmax.f32 %v625_v42, 0.0 }
  0xf3   : > { %v754_v55 = vmax.f32 %v636_v46, 0.0  ;;  %v770_v56 = vmax.f32 %v700_v49, 0.0 }
  0xf4   : > { %v752_v58 = vmax.f32 %v628_v51, 0.0  ;;  %v768_v59 = vmax.f32 %v692_v53, 0.0 }
  0xf5   : > { %v784_v60 = vpack.c.bf16 %v754_v55, %v753_v54  ;;  %v2258_v61 = vpack.c.bf16 %v770_v56, %v769_v48 }
  0xf6   : > { %v783_v62 = vpack.c.bf16 %v752_v58, %v751_v57  ;;  %v1852_v63 = vpop.f32.mrb[4].mxu0  ;;  %v2260_v0 = vpack.c.bf16 %v768_v59, %v767_v52  ;;  %v1868_v1 = vpop.f32.mrb[4].mxu1 }
  0xf7   : > { %v649_v2 = vadd.f32 %v1852_v63, %v2248_v35  ;;  %v640_v3 = vpop.f32.mrb[5].mxu0  ;;  %v713_v4 = vadd.f32 %v1868_v1, %v2248_v35  ;;  %v704_v5 = vpop.f32.mrb[5].mxu1 }
  0xf8   : > { %v641_v6 = vadd.f32 %v2248_v35, %v640_v3  ;;  %v1853_v7 = vpop.f32.mrb[6].mxu0  ;;  %1894 = vmatprep.mubr.bf16.mxu1 %v783_v62  ;;  %v705_v8 = vadd.f32 %v2248_v35, %v704_v5  ;;  %v1869_v9 = vpop.f32.mrb[6].mxu1 }
  0xf9   : > { %v652_v10 = vadd.f32 %v1853_v7, %v2248_v35  ;;  %v643_v11 = vpop.f32.mrb[7].mxu0  ;;  %1895 = vmatmul.mubr.bf16.vlgmr.msra.gmra.mrb[16].mxu1 %v784_v60  ;;  %v773_v12 = vmax.f32 %v713_v4, 0.0  ;;  %v716_v13 = vadd.f32 %v1869_v9, %v2248_v35  ;;  %v707_v14 = vpop.f32.mrb[7].mxu1  ;;  %v757_v18 = vmax.f32 %v649_v2, 0.0 }
  0xfa   : > { %v644_v15 = vadd.f32 %v2248_v35, %v643_v11  ;;  %v771_v16 = vmax.f32 %v705_v8, 0.0  ;;  %v708_v17 = vadd.f32 %v2248_v35, %v707_v14  ;;  %v755_v21 = vmax.f32 %v641_v6, 0.0 }
  0xfb   : > { %v758_v19 = vmax.f32 %v652_v10, 0.0  ;;  %v774_v20 = vmax.f32 %v716_v13, 0.0 }
  0xfc   : > { %v756_v22 = vmax.f32 %v644_v15, 0.0  ;;  %v772_v23 = vmax.f32 %v708_v17, 0.0 }
  0xfd   : > { %v786_v24 = vpack.c.bf16 %v758_v19, %v757_v18  ;;  %v2270_v25 = vpack.c.bf16 %v774_v20, %v773_v12 }
  0xfe   : > { %v785_v26 = vpack.c.bf16 %v756_v22, %v755_v21  ;;  %v1856_v27 = vpop.f32.mrb[8].mxu0  ;;  %v2272_v28 = vpack.c.bf16 %v772_v23, %v771_v16  ;;  %v1872_v29 = vpop.f32.mrb[8].mxu1  ;;  %v1313_v23 = vld [vmem:[%s369_s24 + $0x10] sm:$0xff] }
  0xff   : > { %v665_v30 = vadd.f32 %v1856_v27, %v2248_v35  ;;  %v656_v31 = vpop.f32.mrb[9].mxu0  ;;  %v729_v32 = vadd.f32 %v1872_v29, %v2248_v35  ;;  %v720_v33 = vpop.f32.mrb[9].mxu1  ;;  %v1316_v27 = vld [vmem:[%s369_s24 + $0x28] sm:$0xff]  ;;  %v1318_v29 = vld [vmem:[%s369_s24 + $0x38] sm:$0xff] }
 0x100   : > { %v657_v34 = vadd.f32 %v2248_v35, %v656_v31  ;;  %v1857_v36 = vpop.f32.mrb[10].mxu0  ;;  %1898 = vmatprep.mubr.bf16.mxu1 %v785_v26  ;;  %v721_v37 = vadd.f32 %v2248_v35, %v720_v33  ;;  %v1873_v38 = vpop.f32.mrb[10].mxu1  ;;  %v1312_v26 = vld [vmem:[%s369_s24 + $0x8] sm:$0xff]  ;;  %v2082_v31 = vmov 1   ;;  %v2084_v33 = vmov 3  }
 0x101   : > { %v668_v39 = vadd.f32 %v1857_v36, %v2248_v35  ;;  %v659_v40 = vpop.f32.mrb[11].mxu0  ;;  %1899 = vmatmul.mubr.bf16.gmra.mrb[20].mxu1 %v786_v24  ;;  %v777_v41 = vmax.f32 %v729_v32, 0.0  ;;  %v732_v42 = vadd.f32 %v1873_v38, %v2248_v35  ;;  %v723_v43 = vpop.f32.mrb[11].mxu1  ;;  %v761_v47 = vmax.f32 %v665_v30, 0.0  ;;  %v1311_v24 = vld [vmem:[%s369_s24] sm:$0xff]  ;;  %v1317_v30 = vld [vmem:[%s369_s24 + $0x30] sm:$0xff] }
 0x102   : > { %v660_v44 = vadd.f32 %v2248_v35, %v659_v40  ;;  %v775_v45 = vmax.f32 %v721_v37, 0.0  ;;  %v724_v46 = vadd.f32 %v2248_v35, %v723_v43  ;;  %v759_v50 = vmax.f32 %v657_v34, 0.0  ;;  %v2307_v34 = vld [vmem:[%s2405_s5] ss:$0 sm:$0xff] }
 0x103   : > { %v762_v48 = vmax.f32 %v668_v39, 0.0  ;;  %v778_v49 = vmax.f32 %v732_v42, 0.0  ;;  %v2083_v32 = vmov 2  }
 0x104   : > { %v760_v51 = vmax.f32 %v660_v44, 0.0  ;;  %v776_v52 = vmax.f32 %v724_v46, 0.0 }
 0x105   : > { %v788_v53 = vpack.c.bf16 %v762_v48, %v761_v47  ;;  %v796_v54 = vpack.c.bf16 %v778_v49, %v777_v41 }
 0x106   : > { %v787_v55 = vpack.c.bf16 %v760_v51, %v759_v50  ;;  %v1860_v56 = vpop.f32.mrb[12].mxu0  ;;  %v795_v57 = vpack.c.bf16 %v776_v52, %v775_v45  ;;  %v1876_v58 = vpop.f32.mrb[12].mxu1 }
 0x107   : > { %v681_v59 = vadd.f32 %v1860_v56, %v2248_v35  ;;  %v672_v60 = vpop.f32.mrb[13].mxu0  ;;  %v745_v62 = vadd.f32 %v1876_v58, %v2248_v35  ;;  %v736_v63 = vpop.f32.mrb[13].mxu1 }
 0x108   : > { %v673_v1 = vadd.f32 %v2248_v35, %v672_v60  ;;  %v1861_v2 = vpop.f32.mrb[14].mxu0  ;;  %1902 = vmatprep.mubr.bf16.mxu1 %v787_v55  ;;  %v737_v3 = vadd.f32 %v2248_v35, %v736_v63  ;;  %v1877_v4 = vpop.f32.mrb[14].mxu1 }
 0x109   : > { %v684_v5 = vadd.f32 %v1861_v2, %v2248_v35  ;;  %v675_v6 = vpop.f32.mrb[15].mxu0  ;;  %1903 = vmatmul.mubr.bf16.gmra.mrb[24].mxu1 %v788_v53  ;;  %v781_v7 = vmax.f32 %v745_v62, 0.0  ;;  %v748_v8 = vadd.f32 %v1877_v4, %v2248_v35  ;;  %v739_v9 = vpop.f32.mrb[15].mxu1  ;;  %v765_v13 = vmax.f32 %v681_v59, 0.0 }
 0x10a   : > { %v676_v10 = vadd.f32 %v2248_v35, %v675_v6  ;;  %v779_v11 = vmax.f32 %v737_v3, 0.0  ;;  %v740_v12 = vadd.f32 %v2248_v35, %v739_v9  ;;  %v763_v16 = vmax.f32 %v673_v1, 0.0  ;;  %v2055_v35 = vld [vmem:[%s2406_s6 + $0x30] sm:$0xff]  }
 0x10b   : > { %v766_v14 = vmax.f32 %v684_v5, 0.0  ;;  %v782_v15 = vmax.f32 %v748_v8, 0.0  ;;  %1938 = vmatprep.subr.bf16.mxu0 %v2055_v35 }
 0x10c   : > { %v764_v17 = vmax.f32 %v676_v10, 0.0  ;;  %v780_v18 = vmax.f32 %v740_v12, 0.0  ;;  %1939 = vmatpush3.bf16.msra.mxu0 %v2055_v35 }
 0x10d   : > { %v790_v19 = vpack.c.bf16 %v766_v14, %v765_v13  ;;  %v798_v20 = vpack.c.bf16 %v782_v15, %v781_v7 }
 0x10e   : > { %v789_v21 = vpack.c.bf16 %v764_v17, %v763_v16  ;;  %v797_v22 = vpack.c.bf16 %v780_v18, %v779_v11 }
 0x110   : > { %1906 = vmatprep.mubr.bf16.mxu1 %v789_v21 }
 0x111   : > { %1907 = vmatmul.mubr.bf16.gmra.mrb[28].mxu1 %v790_v19 }
 0x112   : > { %1910 = vmatprep.mubr.bf16.mxu1 %v2260_v0  ;;  %v2056_v0 = vld [vmem:[%s2406_s6 + $0x38] sm:$0xff]  }
 0x113   : > { %1940 = vmatprep.subr.bf16.mxu0 %v2056_v0 }
 0x114   : > { %1941 = vmatpush3.bf16.msra.mxu0 %v2056_v0 }
 0x119   : > { %1911 = vmatmul.mubr.bf16.gmra.mrb[32].mxu1 %v2258_v61  ;;  %v2081_v61 = vmov 0  }
 0x11a   : > { %1914 = vmatprep.mubr.bf16.mxu1 %v2272_v28  ;;  %2013 = vset.pattern.permute.xlu1 %v2081_v61  ;;  %v1315_v28 = vld [vmem:[%s369_s24 + $0x20] sm:$0xff] }
 0x11b   : > { %2012 = vset.pattern.permute.xlu0 %v2081_v61  ;;  %1331 = vperm.xlu1 %2013, %v1313_v23  }
 0x11c   : > { %1321 = vperm.xlu0 %2012, %v1311_v24  }
 0x120   : > { %1326 = vperm.xlu0 %2012, %v1312_v26  }
 0x121   : > { %1915 = vmatmul.mubr.bf16.gmra.mrb[36].mxu1 %v2270_v25  ;;  %v1314_v25 = vld [vmem:[%s369_s24 + $0x18] sm:$0xff] }
 0x122   : > { %1918 = vmatprep.mubr.bf16.mxu1 %v795_v57  ;;  %1336 = vperm.xlu1 %2013, %v1314_v25  }
 0x124   : > { %1341 = vperm.xlu0 %2012, %v1315_v28  }
 0x126   : > { %1346 = vperm.xlu1 %2013, %v1316_v27  }
 0x128   : > { %1351 = vperm.xlu0 %2012, %v1317_v30  }
 0x129   : > { %1919 = vmatmul.mubr.bf16.gmra.mrb[40].mxu1 %v796_v54 }
 0x12a   : > { %1922 = vmatprep.mubr.bf16.mxu1 %v797_v22  ;;  %1356 = vperm.xlu1 %2013, %v1318_v29  }
 0x12c   : > { %2014 = vset.pattern.permute.xlu0 %v2082_v31 }
 0x12d   : > { %1368 = vperm.xlu0 %2014, %v1311_v24  }
 0x12e   : > { %2015 = vset.pattern.permute.xlu1 %v2082_v31 }
 0x12f   : > { %1372 = vperm.xlu1 %2015, %v1312_v26  }
 0x131   : > { %1923 = vmatmul.mubr.bf16.gmra.mrb[44].mxu1 %v798_v20  ;;  %1380 = vperm.xlu0 %2014, %v1314_v25  }
 0x133   : > { %1376 = vperm.xlu1 %2015, %v1313_v23  }
 0x135   : > { %1388 = vperm.xlu0 %2014, %v1316_v27  }
 0x137   : > { %1384 = vperm.xlu1 %2015, %v1315_v28  }
 0x139   : > { %1396 = vperm.xlu0 %2014, %v1318_v29  }
 0x13b   : > { %1392 = vperm.xlu1 %2015, %v1317_v30  }
 0x13d   : > { %2017 = vset.pattern.permute.xlu0 %v2083_v32 }
 0x13e   : > { %1420 = vperm.xlu0 %2017, %v1312_v26  }
 0x13f   : > { %2016 = vset.pattern.permute.xlu1 %v2083_v32 }
 0x140   : > { %1416 = vperm.xlu1 %2016, %v1311_v24  }
 0x142   : > { %1432 = vperm.xlu0 %2017, %v1315_v28  }
 0x144   : > { %1424 = vperm.xlu1 %2016, %v1313_v23  }
 0x146   : > { %1440 = vperm.xlu0 %2017, %v1317_v30  }
 0x148   : > { %1428 = vperm.xlu1 %2016, %v1314_v25  }
 0x14a   : > { %2018 = vset.pattern.permute.xlu0 %v2084_v33 }
 0x14b   : > { %1464 = vperm.xlu0 %2018, %v1311_v24  }
 0x14c   : > { %1436 = vperm.xlu1 %2016, %v1316_v27  }
 0x14f   : > { %1476 = vperm.xlu0 %2018, %v1314_v25  }
 0x150   : > { %1444 = vperm.xlu1 %2016, %v1318_v29  }
 0x153   : > { %1484 = vperm.xlu0 %2018, %v1316_v27  }
 0x154   : > { %2019 = vset.pattern.permute.xlu1 %v2084_v33 }
 0x155   : > { %1468 = vperm.xlu1 %2019, %v1312_v26  }
 0x157   : > { %1492 = vperm.xlu0 %2018, %v1318_v29  }
 0x159   : > { %1472 = vperm.xlu1 %2019, %v1313_v23  }
 0x15d   : > { %1480 = vperm.xlu1 %2019, %v1315_v28  }
 0x161   : > { %1488 = vperm.xlu1 %2019, %v1317_v30  }
 0x1cc   : > { %v1896_v36 = vpop.f32.mrb[16].mxu1 }
 0x1cd   : > { %v913_v37 = vadd.f32 %v1896_v36, %v2307_v34  ;;  %v904_v38 = vpop.f32.mrb[17].mxu1 }
 0x1ce   : > { %v905_v39 = vadd.f32 %v2307_v34, %v904_v38  ;;  %v1897_v40 = vpop.f32.mrb[18].mxu1 }
 0x1cf   : > { %v916_v41 = vadd.f32 %v1897_v40, %v2307_v34  ;;  %v907_v42 = vpop.f32.mrb[19].mxu1  ;;  %v1033_v44 = vmax.f32 %v913_v37, 0.0 }
 0x1d0   : > { %v908_v43 = vadd.f32 %v2307_v34, %v907_v42  ;;  %v1031_v46 = vmax.f32 %v905_v39, 0.0 }
 0x1d1   : > { %v1034_v45 = vmax.f32 %v916_v41, 0.0 }
 0x1d2   : > { %v1032_v47 = vmax.f32 %v908_v43, 0.0 }
 0x1d3   : > { %v1064_v48 = vpack.c.bf16 %v1034_v45, %v1033_v44 }
 0x1d4   : > { %v1063_v49 = vpack.c.bf16 %v1032_v47, %v1031_v46  ;;  %v1900_v50 = vpop.f32.mrb[20].mxu1 }
 0x1d5   : > { %v929_v51 = vadd.f32 %v1900_v50, %v2307_v34  ;;  %v920_v52 = vpop.f32.mrb[21].mxu1 }
 0x1d6   : > { %v921_v53 = vadd.f32 %v2307_v34, %v920_v52  ;;  %v1901_v54 = vpop.f32.mrb[22].mxu1  ;;  %1942 = vmatprep.mubr.bf16.mxu0 %v1063_v49 }
 0x1d7   : > { %v932_v55 = vadd.f32 %v1901_v54, %v2307_v34  ;;  %v923_v56 = vpop.f32.mrb[23].mxu1  ;;  %1943 = vmatmul.mubr.bf16.vlgmr.msra.gmra.mrb[16].mxu0 %v1064_v48  ;;  %v1037_v58 = vmax.f32 %v929_v51, 0.0 }
 0x1d8   : > { %v924_v57 = vadd.f32 %v2307_v34, %v923_v56  ;;  %v1035_v60 = vmax.f32 %v921_v53, 0.0 }
 0x1d9   : > { %v1038_v59 = vmax.f32 %v932_v55, 0.0 }
 0x1da   : > { %v1036_v62 = vmax.f32 %v924_v57, 0.0 }
 0x1db   : > { %v1066_v63 = vpack.c.bf16 %v1038_v59, %v1037_v58 }
 0x1dc   : > { %v1065_v1 = vpack.c.bf16 %v1036_v62, %v1035_v60  ;;  %v1904_v2 = vpop.f32.mrb[24].mxu1 }
 0x1dd   : > { %v945_v3 = vadd.f32 %v1904_v2, %v2307_v34  ;;  %v936_v4 = vpop.f32.mrb[25].mxu1 }
 0x1de   : > { %v937_v5 = vadd.f32 %v2307_v34, %v936_v4  ;;  %v1905_v6 = vpop.f32.mrb[26].mxu1  ;;  %1946 = vmatprep.mubr.bf16.mxu0 %v1065_v1 }
 0x1df   : > { %v948_v7 = vadd.f32 %v1905_v6, %v2307_v34  ;;  %v939_v8 = vpop.f32.mrb[27].mxu1  ;;  %1947 = vmatmul.mubr.bf16.gmra.mrb[20].mxu0 %v1066_v63  ;;  %v1041_v10 = vmax.f32 %v945_v3, 0.0 }
 0x1e0   : > { %v940_v9 = vadd.f32 %v2307_v34, %v939_v8  ;;  %v1039_v12 = vmax.f32 %v937_v5, 0.0 }
 0x1e1   : > { %v1042_v11 = vmax.f32 %v948_v7, 0.0 }
 0x1e2   : > { %v1040_v13 = vmax.f32 %v940_v9, 0.0 }
 0x1e3   : > { %v1068_v14 = vpack.c.bf16 %v1042_v11, %v1041_v10 }
 0x1e4   : > { %v1067_v15 = vpack.c.bf16 %v1040_v13, %v1039_v12  ;;  %v1908_v16 = vpop.f32.mrb[28].mxu1 }
 0x1e5   : > { %v961_v17 = vadd.f32 %v1908_v16, %v2307_v34  ;;  %v952_v18 = vpop.f32.mrb[29].mxu1 }
 0x1e6   : > { %v953_v19 = vadd.f32 %v2307_v34, %v952_v18  ;;  %v1909_v20 = vpop.f32.mrb[30].mxu1  ;;  %1950 = vmatprep.mubr.bf16.mxu0 %v1067_v15 }
 0x1e7   : > { %v964_v21 = vadd.f32 %v1909_v20, %v2307_v34  ;;  %v955_v22 = vpop.f32.mrb[31].mxu1  ;;  %1951 = vmatmul.mubr.bf16.gmra.mrb[24].mxu0 %v1068_v14  ;;  %v1045_v0 = vmax.f32 %v961_v17, 0.0 }
 0x1e8   : > { %v956_v35 = vadd.f32 %v2307_v34, %v955_v22  ;;  %v1043_v23 = vmax.f32 %v953_v19, 0.0 }
 0x1e9   : > { %v1046_v61 = vmax.f32 %v964_v21, 0.0 }
 0x1ea   : > { %v1044_v24 = vmax.f32 %v956_v35, 0.0  ;;  %v1332_v35 = vpop.permute.xlu1 %1331 }
 0x1eb   : > { %v1070_v25 = vpack.c.bf16 %v1046_v61, %v1045_v0 }
 0x1ec   : > { %v1069_v26 = vpack.c.bf16 %v1044_v24, %v1043_v23  ;;  %v1912_v27 = vpop.f32.mrb[32].mxu1  ;;  %v1322_v23 = vpop.permute.xlu0 %1321 }
 0x1ed   : > { %v977_v28 = vadd.f32 %v1912_v27, %v2307_v34  ;;  %v968_v29 = vpop.f32.mrb[33].mxu1 }
 0x1ee   : > { %v969_v30 = vadd.f32 %v2307_v34, %v968_v29  ;;  %v1913_v31 = vpop.f32.mrb[34].mxu1  ;;  %1954 = vmatprep.mubr.bf16.mxu0 %v1069_v26  ;;  %v1337_v0 = vpop.permute.xlu1 %1336 }
 0x1ef   : > { %v980_v32 = vadd.f32 %v1913_v31, %v2307_v34  ;;  %v971_v33 = vpop.f32.mrb[35].mxu1  ;;  %1955 = vmatmul.mubr.bf16.gmra.mrb[28].mxu0 %v1070_v25  ;;  %v1049_v37 = vmax.f32 %v977_v28, 0.0 }
 0x1f0   : > { %v972_v36 = vadd.f32 %v2307_v34, %v971_v33  ;;  %v1047_v39 = vmax.f32 %v969_v30, 0.0  ;;  %v1327_v25 = vpop.permute.xlu0 %1326 }
 0x1f1   : > { %v1050_v38 = vmax.f32 %v980_v32, 0.0 }
 0x1f2   : > { %v1048_v40 = vmax.f32 %v972_v36, 0.0  ;;  %v2341_v61 = vpop.permute.xlu1 %1346 }
 0x1f3   : > { %v1072_v41 = vpack.c.bf16 %v1050_v38, %v1049_v37 }
 0x1f4   : > { %v1071_v42 = vpack.c.bf16 %v1048_v40, %v1047_v39  ;;  %v1916_v43 = vpop.f32.mrb[36].mxu1  ;;  %v1342_v27 = vpop.permute.xlu0 %1341 }
 0x1f5   : > { %v993_v44 = vadd.f32 %v1916_v43, %v2307_v34  ;;  %v984_v45 = vpop.f32.mrb[37].mxu1 }
 0x1f6   : > { %v985_v46 = vadd.f32 %v2307_v34, %v984_v45  ;;  %v1917_v47 = vpop.f32.mrb[38].mxu1  ;;  %1958 = vmatprep.mubr.bf16.mxu0 %v1071_v42  ;;  %v2343_v24 = vpop.permute.xlu1 %1356 }
 0x1f7   : > { %v996_v48 = vadd.f32 %v1917_v47, %v2307_v34  ;;  %v987_v49 = vpop.f32.mrb[39].mxu1  ;;  %1959 = vmatmul.mubr.bf16.gmra.mrb[32].mxu0 %v1072_v41  ;;  %v1053_v51 = vmax.f32 %v993_v44, 0.0  ;;  %v2350_v44 = vld [vmem:[%s2407_s7] ss:$0 sm:$0xff] }
 0x1f8   : > { %v988_v50 = vadd.f32 %v2307_v34, %v987_v49  ;;  %v1051_v53 = vmax.f32 %v985_v46, 0.0 }
 0x1f9   : > { %v1054_v52 = vmax.f32 %v996_v48, 0.0 }
 0x1fa   : > { %v1052_v54 = vmax.f32 %v988_v50, 0.0  ;;  %v1373_v26 = vpop.permute.xlu1 %1372 }
 0x1fb   : > { %v1074_v55 = vpack.c.bf16 %v1054_v52, %v1053_v51 }
 0x1fc   : > { %v1073_v56 = vpack.c.bf16 %v1052_v54, %v1051_v53  ;;  %v1920_v57 = vpop.f32.mrb[40].mxu1 }
 0x1fd   : > { %v1009_v58 = vadd.f32 %v1920_v57, %v2307_v34  ;;  %v1000_v59 = vpop.f32.mrb[41].mxu1 }
 0x1fe   : > { %v1001_v60 = vadd.f32 %v2307_v34, %v1000_v59  ;;  %v1921_v62 = vpop.f32.mrb[42].mxu1  ;;  %1962 = vmatprep.mubr.bf16.mxu0 %v1073_v56  ;;  %v1377_v28 = vpop.permute.xlu1 %1376 }
 0x1ff   : > { %v1012_v63 = vadd.f32 %v1921_v62, %v2307_v34  ;;  %v1003_v1 = vpop.f32.mrb[43].mxu1  ;;  %1963 = vmatmul.mubr.bf16.gmra.mrb[36].mxu0 %v1074_v55  ;;  %v1057_v3 = vmax.f32 %v1009_v58, 0.0 }
 0x200   : > { %v1004_v2 = vadd.f32 %v2307_v34, %v1003_v1  ;;  %v1055_v5 = vmax.f32 %v1001_v60, 0.0 }
 0x201   : > { %v1058_v4 = vmax.f32 %v1012_v63, 0.0 }
 0x202   : > { %v1056_v6 = vmax.f32 %v1004_v2, 0.0  ;;  %v1385_v29 = vpop.permute.xlu1 %1384 }
 0x203   : > { %v1076_v7 = vpack.c.bf16 %v1058_v4, %v1057_v3 }
 0x204   : > { %v1075_v8 = vpack.c.bf16 %v1056_v6, %v1055_v5  ;;  %v1924_v9 = vpop.f32.mrb[44].mxu1 }
 0x205   : > { %v1025_v10 = vadd.f32 %v1924_v9, %v2307_v34  ;;  %v1016_v11 = vpop.f32.mrb[45].mxu1 }
 0x206   : > { %v1017_v12 = vadd.f32 %v2307_v34, %v1016_v11  ;;  %v1925_v13 = vpop.f32.mrb[46].mxu1  ;;  %1966 = vmatprep.mubr.bf16.mxu0 %v1075_v8  ;;  %v1393_v37 = vpop.permute.xlu1 %1392 }
 0x207   : > { %v1028_v14 = vadd.f32 %v1925_v13, %v2307_v34  ;;  %v1019_v15 = vpop.f32.mrb[47].mxu1  ;;  %1967 = vmatmul.mubr.bf16.gmra.mrb[40].mxu0 %v1076_v7  ;;  %v1061_v17 = vmax.f32 %v1025_v10, 0.0 }
 0x208   : > { %v1020_v16 = vadd.f32 %v2307_v34, %v1019_v15  ;;  %v1059_v19 = vmax.f32 %v1017_v12, 0.0  ;;  %v1352_v34 = vpop.permute.xlu0 %1351 }
 0x209   : > { %v1062_v18 = vmax.f32 %v1028_v14, 0.0 }
 0x20a   : > { %v1060_v20 = vmax.f32 %v1020_v16, 0.0  ;;  %v2345_v43 = vpop.permute.xlu1 %1416 }
 0x20b   : > { %v1078_v21 = vpack.c.bf16 %v1062_v18, %v1061_v17 }
 0x20c   : > { %v1077_v22 = vpack.c.bf16 %v1060_v20, %v1059_v19  ;;  %v1369_v33 = vpop.permute.xlu0 %1368 }
 0x20e   : > { %1970 = vmatprep.mubr.bf16.mxu0 %v1077_v22  ;;  %v1425_v50 = vpop.permute.xlu1 %1424 }
 0x20f   : > { %1971 = vmatmul.mubr.bf16.gmra.mrb[44].mxu0 %v1078_v21 }
 0x210   : > { %v1381_v39 = vpop.permute.xlu0 %1380 }
 0x212   : > { %v1429_v10 = vpop.permute.xlu1 %1428 }
 0x214   : > { %v1389_v45 = vpop.permute.xlu0 %1388 }
 0x218   : > { %v1397_v63 = vpop.permute.xlu0 %1396 }
 0x21c   : > { %v1421_v14 = vpop.permute.xlu0 %1420 }
 0x2aa   : > { %v1944_v30 = vpop.f32.mrb[16].mxu0 }
 0x2ab   : > { %v1184_v31 = vpop.f32.mrb[17].mxu0  ;;  %v1193_v46 = vadd.f32 %v1944_v30, %v2350_v44 }
 0x2ac   : > { %v1945_v32 = vpop.f32.mrb[18].mxu0  ;;  %v1185_v47 = vadd.f32 %v2350_v44, %v1184_v31 }
 0x2ad   : > { %v1187_v36 = vpop.f32.mrb[19].mxu0  ;;  %v1196_v49 = vadd.f32 %v1945_v32, %v2350_v44  ;;  %v1361_v56 = vmul.f32 %v1332_v35, %v1193_v46 }
 0x2ae   : > { %v1188_v53 = vadd.f32 %v2350_v44, %v1187_v36  ;;  %v1359_v60 = vmul.f32 %v1322_v23, %v1185_v47 }
 0x2af   : > { %v1362_v2 = vmul.f32 %v1337_v0, %v1196_v49 }
 0x2b0   : > { %v1360_v5 = vmul.f32 %v1327_v25, %v1188_v53 }
 0x2b2   : > { %v1948_v38 = vpop.f32.mrb[20].mxu0 }
 0x2b3   : > { %v1200_v40 = vpop.f32.mrb[21].mxu0  ;;  %v1209_v8 = vadd.f32 %v1948_v38, %v2350_v44 }
 0x2b4   : > { %v1949_v41 = vpop.f32.mrb[22].mxu0  ;;  %v1201_v11 = vadd.f32 %v2350_v44, %v1200_v40 }
 0x2b5   : > { %v1203_v42 = vpop.f32.mrb[23].mxu0  ;;  %v1212_v15 = vadd.f32 %v1949_v41, %v2350_v44  ;;  %v1365_v21 = vmul.f32 %v1352_v34, %v1209_v8 }
 0x2b6   : > { %v1204_v18 = vadd.f32 %v2350_v44, %v1203_v42  ;;  %v1363_v23 = vmul.f32 %v1342_v27, %v1201_v11 }
 0x2b8   : > { %v1364_v32 = vmul.f32 %v2341_v61, %v1204_v18 }
 0x2ba   : > { %v1952_v48 = vpop.f32.mrb[24].mxu0 }
 0x2bb   : > { %v1225_v51 = vadd.f32 %v1952_v48, %v2350_v44  ;;  %v1216_v52 = vpop.f32.mrb[25].mxu0 }
 0x2bc   : > { %v1217_v54 = vadd.f32 %v2350_v44, %v1216_v52  ;;  %v1953_v55 = vpop.f32.mrb[26].mxu0 }
 0x2bd   : > { %v1401_v57 = vmul.f32 %v1377_v28, %v1225_v51  ;;  %v1228_v58 = vadd.f32 %v1953_v55, %v2350_v44  ;;  %v1219_v59 = vpop.f32.mrb[27].mxu0  ;;  %v1366_v28 = vmul.f32 %v2343_v24, %v1212_v15 }
 0x2be   : > { %v1399_v62 = vmul.f32 %v1369_v33, %v1217_v54  ;;  %v1220_v1 = vadd.f32 %v2350_v44, %v1219_v59  ;;  %v1437_v33 = vpop.permute.xlu1 %1436 }
 0x2bf   : > { %v1409_v3 = vadd.f32 %v1401_v57, %v1361_v56  ;;  %v1402_v4 = vmul.f32 %v1381_v39, %v1228_v58  ;;  %v1433_v39 = vpop.permute.xlu0 %1432 }
 0x2c0   : > { %v1407_v6 = vadd.f32 %v1399_v62, %v1359_v60  ;;  %v1400_v7 = vmul.f32 %v1373_v26, %v1220_v1 }
 0x2c1   : > { %v1410_v9 = vadd.f32 %v1402_v4, %v1362_v2 }
 0x2c2   : > { %v1408_v12 = vadd.f32 %v1400_v7, %v1360_v5  ;;  %v1956_v13 = vpop.f32.mrb[28].mxu0  ;;  %v1445_v48 = vpop.permute.xlu1 %1444 }
 0x2c3   : > { %v1241_v16 = vadd.f32 %v1956_v13, %v2350_v44  ;;  %v1232_v17 = vpop.f32.mrb[29].mxu0  ;;  %v1441_v49 = vpop.permute.xlu0 %1440 }
 0x2c4   : > { %v1233_v19 = vadd.f32 %v2350_v44, %v1232_v17  ;;  %v1957_v20 = vpop.f32.mrb[30].mxu0 }
 0x2c5   : > { %v1405_v22 = vmul.f32 %v1393_v37, %v1241_v16  ;;  %v1244_v35 = vadd.f32 %v1957_v20, %v2350_v44  ;;  %v1235_v0 = vpop.f32.mrb[31].mxu0 }
 0x2c6   : > { %v1403_v25 = vmul.f32 %v1385_v29, %v1233_v19  ;;  %v1236_v26 = vadd.f32 %v2350_v44, %v1235_v0  ;;  %v1469_v57 = vpop.permute.xlu1 %1468 }
 0x2c7   : > { %v1413_v30 = vadd.f32 %v1405_v22, %v1365_v21  ;;  %v1406_v31 = vmul.f32 %v1397_v63, %v1244_v35  ;;  %v1465_v60 = vpop.permute.xlu0 %1464 }
 0x2c8   : > { %v1411_v36 = vadd.f32 %v1403_v25, %v1363_v23  ;;  %v1404_v38 = vmul.f32 %v1389_v45, %v1236_v26 }
 0x2c9   : > { %v1414_v40 = vadd.f32 %v1406_v31, %v1366_v28 }
 0x2ca   : > { %v1412_v34 = vadd.f32 %v1404_v38, %v1364_v32  ;;  %v1960_v37 = vpop.f32.mrb[32].mxu0  ;;  %v1473_v7 = vpop.permute.xlu1 %1472 }
 0x2cb   : > { %v1257_v41 = vadd.f32 %v1960_v37, %v2350_v44  ;;  %v1248_v42 = vpop.f32.mrb[33].mxu0  ;;  %v1477_v11 = vpop.permute.xlu0 %1476 }
 0x2cc   : > { %v1249_v27 = vadd.f32 %v2350_v44, %v1248_v42  ;;  %v1961_v29 = vpop.f32.mrb[34].mxu0 }
 0x2cd   : > { %v1449_v46 = vmul.f32 %v1425_v50, %v1257_v41  ;;  %v1260_v24 = vadd.f32 %v1961_v29, %v2350_v44  ;;  %v1251_v47 = vpop.f32.mrb[35].mxu0 }
 0x2ce   : > { %v1447_v61 = vmul.f32 %v2345_v43, %v1249_v27  ;;  %v1252_v45 = vadd.f32 %v2350_v44, %v1251_v47  ;;  %v1481_v21 = vpop.permute.xlu1 %1480 }
 0x2cf   : > { %v1457_v51 = vadd.f32 %v1449_v46, %v1409_v3  ;;  %v1450_v52 = vmul.f32 %v1429_v10, %v1260_v24  ;;  %v1485_v25 = vpop.permute.xlu0 %1484 }
 0x2d0   : > { %v1455_v53 = vadd.f32 %v1447_v61, %v1407_v6  ;;  %v1448_v54 = vmul.f32 %v1421_v14, %v1252_v45 }
 0x2d1   : > { %v1458_v55 = vadd.f32 %v1450_v52, %v1410_v9 }
 0x2d2   : > { %v1456_v56 = vadd.f32 %v1448_v54, %v1408_v12  ;;  %v1964_v58 = vpop.f32.mrb[36].mxu0 }
 0x2d3   : > { %v1273_v59 = vadd.f32 %v1964_v58, %v2350_v44  ;;  %v1264_v50 = vpop.f32.mrb[37].mxu0  ;;  %v1493_v29 = vpop.permute.xlu0 %1492 }
 0x2d4   : > { %v1265_v62 = vadd.f32 %v2350_v44, %v1264_v50  ;;  %v1965_v63 = vpop.f32.mrb[38].mxu0 }
 0x2d5   : > { %v1453_v1 = vmul.f32 %v1441_v49, %v1273_v59  ;;  %v1276_v43 = vadd.f32 %v1965_v63, %v2350_v44  ;;  %v1267_v2 = vpop.f32.mrb[39].mxu0 }
 0x2d6   : > { %v1451_v4 = vmul.f32 %v1433_v39, %v1265_v62  ;;  %v1268_v3 = vadd.f32 %v2350_v44, %v1267_v2  ;;  %v1489_v39 = vpop.permute.xlu1 %1488 }
 0x2d7   : > { %v1461_v5 = vadd.f32 %v1453_v1, %v1413_v30  ;;  %v1454_v6 = vmul.f32 %v1445_v48, %v1276_v43 }
 0x2d8   : > { %v1459_v8 = vadd.f32 %v1451_v4, %v1411_v36  ;;  %v1452_v9 = vmul.f32 %v1437_v33, %v1268_v3 }
 0x2d9   : > { %v1462_v10 = vadd.f32 %v1454_v6, %v1414_v40 }
 0x2da   : > { %v1460_v12 = vadd.f32 %v1452_v9, %v1412_v34  ;;  %v1968_v13 = vpop.f32.mrb[40].mxu0 }
 0x2db   : > { %v1289_v14 = vadd.f32 %v1968_v13, %v2350_v44  ;;  %v1280_v15 = vpop.f32.mrb[41].mxu0 }
 0x2dc   : > { %v1281_v16 = vadd.f32 %v2350_v44, %v1280_v15  ;;  %v1969_v17 = vpop.f32.mrb[42].mxu0 }
 0x2dd   : > { %v1497_v18 = vmul.f32 %v1473_v7, %v1289_v14  ;;  %v1292_v19 = vadd.f32 %v1969_v17, %v2350_v44  ;;  %v1283_v20 = vpop.f32.mrb[43].mxu0 }
 0x2de   : > { %v1495_v22 = vmul.f32 %v1465_v60, %v1281_v16  ;;  %v1284_v35 = vadd.f32 %v2350_v44, %v1283_v20 }
 0x2df   : > { %v1505_v0 = vadd.f32 %v1497_v18, %v1457_v51  ;;  %v1498_v23 = vmul.f32 %v1477_v11, %v1292_v19 }
 0x2e0   : > { %v1503_v26 = vadd.f32 %v1495_v22, %v1455_v53  ;;  %v1496_v28 = vmul.f32 %v1469_v57, %v1284_v35 }
 0x2e1   : > { %v1506_v30 = vadd.f32 %v1498_v23, %v1458_v55 }
 0x2e2   : > { %v1504_v31 = vadd.f32 %v1496_v28, %v1456_v56  ;;  %v1972_v32 = vpop.f32.mrb[44].mxu0 }
 0x2e3   : > { %v1752_v33 = vpack.c.bf16 %v1506_v30, %v1505_v0  ;;  %v1305_v36 = vadd.f32 %v1972_v32, %v2350_v44  ;;  %v1296_v38 = vpop.f32.mrb[45].mxu0 }
 0x2e4   : > { %v1747_v40 = vpack.c.bf16 %v1504_v31, %v1503_v26  ;;  %v1297_v34 = vadd.f32 %v2350_v44, %v1296_v38  ;;  %v1973_v37 = vpop.f32.mrb[46].mxu0 }
 0x2e5   : > { %1764 = vst [vmem:[%s379_s14 + $0x8] sm:$0xff] %v1752_v33   ;;  %v1501_v41 = vmul.f32 %v1489_v39, %v1305_v36  ;;  %v1308_v42 = vadd.f32 %v1973_v37, %v2350_v44  ;;  %v1299_v27 = vpop.f32.mrb[47].mxu0 }
 0x2e6   : > { %1748 = vst [vmem:[%s379_s14] sm:$0xff] %v1747_v40   ;;  %v1499_v46 = vmul.f32 %v1481_v21, %v1297_v34  ;;  %v1300_v24 = vadd.f32 %v2350_v44, %v1299_v27 }
 0x2e7   : > { %v1509_v47 = vadd.f32 %v1501_v41, %v1461_v5  ;;  %v1502_v48 = vmul.f32 %v1493_v29, %v1308_v42 }
 0x2e8   : > { %v1507_v49 = vadd.f32 %v1499_v46, %v1459_v8  ;;  %v1500_v61 = vmul.f32 %v1485_v25, %v1300_v24 }
 0x2e9   : > { %v1510_v45 = vadd.f32 %v1502_v48, %v1462_v10 }
 0x2ea   : > { %v1508_v51 = vadd.f32 %v1500_v61, %v1460_v12 }
 0x2eb   : > { %v1762_v52 = vpack.c.bf16 %v1510_v45, %v1509_v47 }
 0x2ec   : > { %v1757_v53 = vpack.c.bf16 %v1508_v51, %v1507_v49 }
 0x2ed   : > { %1766 = vst [vmem:[%s379_s14 + $0x18] sm:$0xff] %v1762_v52  }
 0x2ee   : > { %1765 = vst [vmem:[%s379_s14 + $0x10] sm:$0xff] %v1757_v53  }
 0x2ef PF: > { %s18_s29 = sadd.s32 1, %s2079_s29   ;;  %s2409_s27 = smov %s2075_s28 }
 0x2f0   : > { %p15_p5 = scmp.ge.s32.totalorder %s18_s29, 4   ;;  %s2410_s28 = smov %s2412_s30 }
 0x2f2   :  { %17 = sbr.rel (!%p15_p5) target bundleno = 2 (0x2), region = 85 }

</bundles_post_ra>
